<compile_context>
chip_gen: v5e
topology: v5e:2x2
jax: 0.10.0
libtpu: 0.0.40
codegen_flags: <defaults>
</compile_context>

<pallas_src>
import functools

import jax
import jax.numpy as jnp
from jax.experimental import pallas as pl
from jax.experimental.pallas import tpu as pltpu


def _round_up(x, m):
    return ((x + m - 1) // m) * m


# ---------------------------------------------------------------------------
# Pallas kernel: single-K-step matmul with fused bias + activation epilogue.
#   A: (tm, K) bf16,  B: (K, tn) bf16,  bias: (1, tn) f32  ->  O: (tm, tn) f32
# ---------------------------------------------------------------------------
def _matmul_bias_act_kernel(a_ref, b_ref, bias_ref, o_ref, *, activation):
    acc = jnp.dot(a_ref[...], b_ref[...], preferred_element_type=jnp.float32)
    acc = acc + bias_ref[...]
    if activation == "relu":
        acc = jnp.maximum(acc, 0.0)
    o_ref[...] = acc.astype(o_ref.dtype)


def matmul_bias_act(a, b_packed, bias_packed, n_out, activation="none",
                    tm_max=512):
    """a: (M, K).  b_packed: (Kp, Np) bf16 (Kp mult of 8, Np mult of 128).
    bias_packed: (1, Np) f32.  Returns act(a @ b + bias)[:, :n_out] in f32."""
    M, K = a.shape
    Kp, Np = b_packed.shape
    assert Np % 128 == 0 and Kp >= K

    tm = min(tm_max, _round_up(M, 16))
    Mp = _round_up(M, tm)
    tn = 128

    a = a.astype(jnp.bfloat16)
    if Mp != M or Kp != K:
        a = jnp.pad(a, ((0, Mp - M), (0, Kp - K)))

    out = pl.pallas_call(
        functools.partial(_matmul_bias_act_kernel, activation=activation),
        out_shape=jax.ShapeDtypeStruct((Mp, Np), jnp.float32),
        grid_spec=pltpu.PrefetchScalarGridSpec(
            num_scalar_prefetch=0,
            grid=(Mp // tm, Np // tn),
            in_specs=[
                pl.BlockSpec((tm, Kp), lambda i, j: (i, 0)),   # full-K block
                pl.BlockSpec((Kp, tn), lambda i, j: (0, j)),
                pl.BlockSpec((1, tn), lambda i, j: (0, j)),
            ],
            out_specs=pl.BlockSpec((tm, tn), lambda i, j: (i, j)),
        ),
        compiler_params=pltpu.CompilerParams(
            dimension_semantics=("parallel", "parallel")),
    )(a, b_packed, bias_packed)
    return out[:M, :n_out]


# ---------------------------------------------------------------------------
# Glue: im2col, conv wrapper, pooling
# ---------------------------------------------------------------------------
def im2col_3x3(x):
    """x: (N, H, W, C) -> (N*H*W, 9*C), SAME padding, (ky, kx, cin) ordering."""
    N, H, W, C = x.shape
    xp = jnp.pad(x, ((0, 0), (1, 1), (1, 1), (0, 0)))
    cols = [xp[:, dy:dy + H, dx:dx + W, :] for dy in range(3) for dx in range(3)]
    patches = jnp.stack(cols, axis=3)          # (N, H, W, 9, C)
    return patches.reshape(N * H * W, 9 * C)


def conv3x3(x, w_packed, b_packed, cout, activation="relu"):
    """x: (N,H,W,Cin) NHWC; w_packed: (Kp, Np) bf16; b_packed: (1, Np) f32."""
    N, H, W, _ = x.shape
    a = im2col_3x3(x.astype(jnp.bfloat16))     # bf16 patches: half the HBM traffic
    out = matmul_bias_act(a, w_packed, b_packed, cout, activation)
    return out.reshape(N, H, W, cout)


def maxpool2x2(x):
    N, H, W, C = x.shape
    return x.reshape(N, H // 2, 2, W // 2, 2, C).max(axis=(2, 4))


# ---------------------------------------------------------------------------
# Parameters: deterministic synthetic init + one-time packing
# ---------------------------------------------------------------------------
def init_params(key):
    keys = iter(jax.random.split(key, 16))

    def conv_p(cin, cout):
        w = jax.random.normal(next(keys), (3, 3, cin, cout), jnp.float32)
        w = w / jnp.sqrt(9.0 * cin)
        b = 0.01 * jax.random.normal(next(keys), (cout,), jnp.float32)
        return w, b

    def lin_p(din, dout):
        w = jax.random.normal(next(keys), (din, dout), jnp.float32) / jnp.sqrt(din)
        b = 0.01 * jax.random.normal(next(keys), (dout,), jnp.float32)
        return w, b

    def bn_p(c):
        gamma = 1.0 + 0.1 * jax.random.normal(next(keys), (c,), jnp.float32)
        beta = 0.1 * jax.random.normal(next(keys), (c,), jnp.float32)
        return gamma, beta

    return {
        "conv1": conv_p(3, 16),
        "conv2": conv_p(16, 32),
        "conv3": conv_p(32, 64),
        "conv4": conv_p(64, 128),
        "bn": bn_p(32),
        "fc1": lin_p(128, 32),
        "fc2": lin_p(32, 3),
    }


def pack_params(raw):
    """Pre-pack weights ONCE: reshape conv kernels to matmul layout, fold the
    eval-mode BatchNorm into conv2, pad K->mult of 8 and N->mult of 128,
    cast to bf16.  Keeps all padding copies out of the per-forward path."""
    eps = 1e-5

    def pack_mat(w2d, b):
        K, N = w2d.shape
        Kp, Np = _round_up(K, 8), _round_up(N, 128)
        wp = jnp.zeros((Kp, Np), jnp.bfloat16).at[:K, :N].set(
            w2d.astype(jnp.bfloat16))
        bp = jnp.zeros((1, Np), jnp.float32).at[0, :N].set(b)
        return wp, bp

    def pack_conv(w, b, bn=None):
        cout = w.shape[-1]
        w2d = w.reshape(-1, cout)              # (9*Cin, Cout), (ky,kx,cin) order
        if bn is not None:
            # TODO(synk): eval-mode BatchNorm (running_mean=0, running_var=1);
            # training-mode batch statistics are not computed here.
            gamma, beta = bn
            scale = gamma / jnp.sqrt(1.0 + eps)
            w2d = w2d * scale[None, :]
            b = b * scale + beta
        return pack_mat(w2d, b)

    return {
        "conv1": pack_conv(*raw["conv1"]),
        "conv2": pack_conv(*raw["conv2"], bn=raw["bn"]),
        "conv3": pack_conv(*raw["conv3"]),
        "conv4": pack_conv(*raw["conv4"]),
        "fc1": pack_mat(*raw["fc1"]),
        "fc2": pack_mat(*raw["fc2"]),
    }


# ---------------------------------------------------------------------------
# Forward pass (matches MyModel_1.forward, eval-mode BN/Dropout)
# ---------------------------------------------------------------------------
def forward(packed, x_nchw):
    # layout: x_nchw is (N, 3, H, W) like PyTorch; convert to NHWC here.
    x = jnp.transpose(x_nchw, (0, 2, 3, 1)).astype(jnp.float32)

    x = conv3x3(x, *packed["conv1"], 16, "relu")
    x = maxpool2x2(x)

    # BN (eval) is folded into conv2's packed weights/bias; epilogue = ReLU.
    x = conv3x3(x, *packed["conv2"], 32, "relu")
    x = maxpool2x2(x)

    x = conv3x3(x, *packed["conv3"], 64, "relu")
    x = maxpool2x2(x)

    x = conv3x3(x, *packed["conv4"], 128, "relu")
    x = maxpool2x2(x)

    # AdaptiveAvgPool2d(1) + view(-1, 128)
    x = jnp.mean(x, axis=(1, 2))                            # (N, 128)

    x = matmul_bias_act(x, *packed["fc1"], 32, "relu")
    # TODO(synk): Dropout(p=0.25) is eval-mode identity here.
    x = matmul_bias_act(x, *packed["fc2"], 3, "none")
    return x


if __name__ == "__main__":
    key = jax.random.PRNGKey(0)
    pkey, xkey = jax.random.split(key)
    raw_params = init_params(pkey)
    packed_params = pack_params(raw_params)   # one-time weight packing

    # Input: 4 max-pools of stride 2 -> spatial 32 keeps everything even.
    x = jax.random.normal(xkey, (2, 3, 32, 32), jnp.float32)

    fwd = jax.jit(forward)
    out = jax.block_until_ready(fwd(packed_params, x))
    assert out.shape == (2, 3), out.shape
    assert bool(jnp.all(jnp.isfinite(out)))
    print("KERNEL_OK")
</pallas_src>

<mosaic_0001>
module attributes {stable_mosaic.version = 11 : i64} {
  func.func @_matmul_bias_act_kernel(%arg0: i32, %arg1: i32, %arg2: memref<512x32xbf16, #tpu.memory_space<vmem>>, %arg3: memref<32x128xbf16, #tpu.memory_space<vmem>>, %arg4: memref<1x128xf32, #tpu.memory_space<vmem>>, %arg5: memref<512x128xf32, #tpu.memory_space<vmem>>) attributes {dimension_semantics = [#tpu.dimension_semantics<parallel>, #tpu.dimension_semantics<parallel>], iteration_bounds = array<i64: 4, 1>, scalar_prefetch = 0 : i64, scratch_operands = 0 : i64, tpu.core_type = #tpu.core_type<tc>, window_params = [{transform_indices = @transform_0, window_bounds = array<i64: 512, 32>}, {transform_indices = @transform_1, window_bounds = array<i64: 32, 128>}, {transform_indices = @transform_2, window_bounds = array<i64: 1, 128>}, {transform_indices = @transform_3, window_bounds = array<i64: 512, 128>}]} {
    %c0 = arith.constant 0 : index
    %c0_0 = arith.constant 0 : index
    %0 = vector.load %arg2[%c0, %c0_0] : memref<512x32xbf16, #tpu.memory_space<vmem>>, vector<512x32xbf16>
    %c0_1 = arith.constant 0 : index
    %c0_2 = arith.constant 0 : index
    %1 = vector.load %arg3[%c0_1, %c0_2] : memref<32x128xbf16, #tpu.memory_space<vmem>>, vector<32x128xbf16>
    %cst = arith.constant dense<0.000000e+00> : vector<512x128xf32>
    %2 = tpu.matmul %0, %1, %cst {dimension_numbers = #tpu.dot_dimension_numbers<[1], [0], [0], [1], [0, 0, 1, 1], [], []>} : vector<512x32xbf16>, vector<32x128xbf16>, vector<512x128xf32> -> vector<512x128xf32>
    %c0_3 = arith.constant 0 : index
    %c0_4 = arith.constant 0 : index
    %3 = vector.load %arg4[%c0_3, %c0_4] : memref<1x128xf32, #tpu.memory_space<vmem>>, vector<1x128xf32>
    %4 = vector.broadcast %3 : vector<1x128xf32> to vector<512x128xf32>
    %5 = arith.addf %2, %4 : vector<512x128xf32>
    %cst_5 = arith.constant 0.000000e+00 : f32
    %6 = vector.broadcast %cst_5 : f32 to vector<512x128xf32>
    %7 = arith.maximumf %5, %6 : vector<512x128xf32>
    %c0_6 = arith.constant 0 : index
    %c0_7 = arith.constant 0 : index
    %8 = vector.load %arg5[%c0_6, %c0_7] : memref<512x128xf32, #tpu.memory_space<vmem>>, vector<512x128xf32>
    tpu.vector_store %arg5[%c0_6, %c0_7], %7 {strides = array<i32>} : memref<512x128xf32, #tpu.memory_space<vmem>>, vector<512x128xf32>,
    return
  }
  func.func @transform_0(%arg0: i32, %arg1: i32) -> (i32, i32) {
    %c0_i32 = arith.constant 0 : i32
    %c0_i32_0 = arith.constant 0 : i32
    return %arg0, %c0_i32 : i32, i32
  }
  func.func @transform_1(%arg0: i32, %arg1: i32) -> (i32, i32) {
    %c0_i32 = arith.constant 0 : i32
    %c0_i32_0 = arith.constant 0 : i32
    return %c0_i32, %arg1 : i32, i32
  }
  func.func @transform_2(%arg0: i32, %arg1: i32) -> (i32, i32) {
    %c0_i32 = arith.constant 0 : i32
    %c0_i32_0 = arith.constant 0 : i32
    return %c0_i32, %arg1 : i32, i32
  }
  func.func @transform_3(%arg0: i32, %arg1: i32) -> (i32, i32) {
    %c0_i32 = arith.constant 0 : i32
    return %arg0, %arg1 : i32, i32
  }
}

module attributes {stable_mosaic.version = 11 : i64} {
  func.func @_matmul_bias_act_kernel(%arg0: i32, %arg1: i32, %arg2: memref<512x144xbf16, #tpu.memory_space<vmem>>, %arg3: memref<144x128xbf16, #tpu.memory_space<vmem>>, %arg4: memref<1x128xf32, #tpu.memory_space<vmem>>, %arg5: memref<512x128xf32, #tpu.memory_space<vmem>>) attributes {dimension_semantics = [#tpu.dimension_semantics<parallel>, #tpu.dimension_semantics<parallel>], iteration_bounds = array<i64: 1, 1>, scalar_prefetch = 0 : i64, scratch_operands = 0 : i64, tpu.core_type = #tpu.core_type<tc>, window_params = [{transform_indices = @transform_0, window_bounds = array<i64: 512, 144>}, {transform_indices = @transform_1, window_bounds = array<i64: 144, 128>}, {transform_indices = @transform_2, window_bounds = array<i64: 1, 128>}, {transform_indices = @transform_3, window_bounds = array<i64: 512, 128>}]} {
    %c0 = arith.constant 0 : index
    %c0_0 = arith.constant 0 : index
    %0 = vector.load %arg2[%c0, %c0_0] : memref<512x144xbf16, #tpu.memory_space<vmem>>, vector<512x144xbf16>
    %c0_1 = arith.constant 0 : index
    %c0_2 = arith.constant 0 : index
    %1 = vector.load %arg3[%c0_1, %c0_2] : memref<144x128xbf16, #tpu.memory_space<vmem>>, vector<144x128xbf16>
    %cst = arith.constant dense<0.000000e+00> : vector<512x128xf32>
    %2 = tpu.matmul %0, %1, %cst {dimension_numbers = #tpu.dot_dimension_numbers<[1], [0], [0], [1], [0, 0, 1, 1], [], []>} : vector<512x144xbf16>, vector<144x128xbf16>, vector<512x128xf32> -> vector<512x128xf32>
    %c0_3 = arith.constant 0 : index
    %c0_4 = arith.constant 0 : index
    %3 = vector.load %arg4[%c0_3, %c0_4] : memref<1x128xf32, #tpu.memory_space<vmem>>, vector<1x128xf32>
    %4 = vector.broadcast %3 : vector<1x128xf32> to vector<512x128xf32>
    %5 = arith.addf %2, %4 : vector<512x128xf32>
    %cst_5 = arith.constant 0.000000e+00 : f32
    %6 = vector.broadcast %cst_5 : f32 to vector<512x128xf32>
    %7 = arith.maximumf %5, %6 : vector<512x128xf32>
    %c0_6 = arith.constant 0 : index
    %c0_7 = arith.constant 0 : index
    %8 = vector.load %arg5[%c0_6, %c0_7] : memref<512x128xf32, #tpu.memory_space<vmem>>, vector<512x128xf32>
    tpu.vector_store %arg5[%c0_6, %c0_7], %7 {strides = array<i32>} : memref<512x128xf32, #tpu.memory_space<vmem>>, vector<512x128xf32>,
    return
  }
  func.func @transform_0(%arg0: i32, %arg1: i32) -> (i32, i32) {
    %c0_i32 = arith.constant 0 : i32
    %c0_i32_0 = arith.constant 0 : i32
    return %arg0, %c0_i32 : i32, i32
  }
  func.func @transform_1(%arg0: i32, %arg1: i32) -> (i32, i32) {
    %c0_i32 = arith.constant 0 : i32
    %c0_i32_0 = arith.constant 0 : i32
    return %c0_i32, %arg1 : i32, i32
  }
  func.func @transform_2(%arg0: i32, %arg1: i32) -> (i32, i32) {
    %c0_i32 = arith.constant 0 : i32
    %c0_i32_0 = arith.constant 0 : i32
    return %c0_i32, %arg1 : i32, i32
  }
  func.func @transform_3(%arg0: i32, %arg1: i32) -> (i32, i32) {
    %c0_i32 = arith.constant 0 : i32
    return %arg0, %arg1 : i32, i32
  }
}

module attributes {stable_mosaic.version = 11 : i64} {
  func.func @_matmul_bias_act_kernel(%arg0: i32, %arg1: i32, %arg2: memref<128x288xbf16, #tpu.memory_space<vmem>>, %arg3: memref<288x128xbf16, #tpu.memory_space<vmem>>, %arg4: memref<1x128xf32, #tpu.memory_space<vmem>>, %arg5: memref<128x128xf32, #tpu.memory_space<vmem>>) attributes {dimension_semantics = [#tpu.dimension_semantics<parallel>, #tpu.dimension_semantics<parallel>], iteration_bounds = array<i64: 1, 1>, scalar_prefetch = 0 : i64, scratch_operands = 0 : i64, tpu.core_type = #tpu.core_type<tc>, window_params = [{transform_indices = @transform_0, window_bounds = array<i64: 128, 288>}, {transform_indices = @transform_1, window_bounds = array<i64: 288, 128>}, {transform_indices = @transform_2, window_bounds = array<i64: 1, 128>}, {transform_indices = @transform_3, window_bounds = array<i64: 128, 128>}]} {
    %c0 = arith.constant 0 : index
    %c0_0 = arith.constant 0 : index
    %0 = vector.load %arg2[%c0, %c0_0] : memref<128x288xbf16, #tpu.memory_space<vmem>>, vector<128x288xbf16>
    %c0_1 = arith.constant 0 : index
    %c0_2 = arith.constant 0 : index
    %1 = vector.load %arg3[%c0_1, %c0_2] : memref<288x128xbf16, #tpu.memory_space<vmem>>, vector<288x128xbf16>
    %cst = arith.constant dense<0.000000e+00> : vector<128x128xf32>
    %2 = tpu.matmul %0, %1, %cst {dimension_numbers = #tpu.dot_dimension_numbers<[1], [0], [0], [1], [0, 0, 1, 1], [], []>} : vector<128x288xbf16>, vector<288x128xbf16>, vector<128x128xf32> -> vector<128x128xf32>
    %c0_3 = arith.constant 0 : index
    %c0_4 = arith.constant 0 : index
    %3 = vector.load %arg4[%c0_3, %c0_4] : memref<1x128xf32, #tpu.memory_space<vmem>>, vector<1x128xf32>
    %4 = vector.broadcast %3 : vector<1x128xf32> to vector<128x128xf32>
    %5 = arith.addf %2, %4 : vector<128x128xf32>
    %cst_5 = arith.constant 0.000000e+00 : f32
    %6 = vector.broadcast %cst_5 : f32 to vector<128x128xf32>
    %7 = arith.maximumf %5, %6 : vector<128x128xf32>
    %c0_6 = arith.constant 0 : index
    %c0_7 = arith.constant 0 : index
    %8 = vector.load %arg5[%c0_6, %c0_7] : memref<128x128xf32, #tpu.memory_space<vmem>>, vector<128x128xf32>
    tpu.vector_store %arg5[%c0_6, %c0_7], %7 {strides = array<i32>} : memref<128x128xf32, #tpu.memory_space<vmem>>, vector<128x128xf32>,
    return
  }
  func.func @transform_0(%arg0: i32, %arg1: i32) -> (i32, i32) {
    %c0_i32 = arith.constant 0 : i32
    %c0_i32_0 = arith.constant 0 : i32
    return %arg0, %c0_i32 : i32, i32
  }
  func.func @transform_1(%arg0: i32, %arg1: i32) -> (i32, i32) {
    %c0_i32 = arith.constant 0 : i32
    %c0_i32_0 = arith.constant 0 : i32
    return %c0_i32, %arg1 : i32, i32
  }
  func.func @transform_2(%arg0: i32, %arg1: i32) -> (i32, i32) {
    %c0_i32 = arith.constant 0 : i32
    %c0_i32_0 = arith.constant 0 : i32
    return %c0_i32, %arg1 : i32, i32
  }
  func.func @transform_3(%arg0: i32, %arg1: i32) -> (i32, i32) {
    %c0_i32 = arith.constant 0 : i32
    return %arg0, %arg1 : i32, i32
  }
}

module attributes {stable_mosaic.version = 11 : i64} {
  func.func @_matmul_bias_act_kernel(%arg0: i32, %arg1: i32, %arg2: memref<32x576xbf16, #tpu.memory_space<vmem>>, %arg3: memref<576x128xbf16, #tpu.memory_space<vmem>>, %arg4: memref<1x128xf32, #tpu.memory_space<vmem>>, %arg5: memref<32x128xf32, #tpu.memory_space<vmem>>) attributes {dimension_semantics = [#tpu.dimension_semantics<parallel>, #tpu.dimension_semantics<parallel>], iteration_bounds = array<i64: 1, 1>, scalar_prefetch = 0 : i64, scratch_operands = 0 : i64, tpu.core_type = #tpu.core_type<tc>, window_params = [{transform_indices = @transform_0, window_bounds = array<i64: 32, 576>}, {transform_indices = @transform_1, window_bounds = array<i64: 576, 128>}, {transform_indices = @transform_2, window_bounds = array<i64: 1, 128>}, {transform_indices = @transform_3, window_bounds = array<i64: 32, 128>}]} {
    %c0 = arith.constant 0 : index
    %c0_0 = arith.constant 0 : index
    %0 = vector.load %arg2[%c0, %c0_0] : memref<32x576xbf16, #tpu.memory_space<vmem>>, vector<32x576xbf16>
    %c0_1 = arith.constant 0 : index
    %c0_2 = arith.constant 0 : index
    %1 = vector.load %arg3[%c0_1, %c0_2] : memref<576x128xbf16, #tpu.memory_space<vmem>>, vector<576x128xbf16>
    %cst = arith.constant dense<0.000000e+00> : vector<32x128xf32>
    %2 = tpu.matmul %0, %1, %cst {dimension_numbers = #tpu.dot_dimension_numbers<[1], [0], [0], [1], [0, 0, 1, 1], [], []>} : vector<32x576xbf16>, vector<576x128xbf16>, vector<32x128xf32> -> vector<32x128xf32>
    %c0_3 = arith.constant 0 : index
    %c0_4 = arith.constant 0 : index
    %3 = vector.load %arg4[%c0_3, %c0_4] : memref<1x128xf32, #tpu.memory_space<vmem>>, vector<1x128xf32>
    %4 = vector.broadcast %3 : vector<1x128xf32> to vector<32x128xf32>
    %5 = arith.addf %2, %4 : vector<32x128xf32>
    %cst_5 = arith.constant 0.000000e+00 : f32
    %6 = vector.broadcast %cst_5 : f32 to vector<32x128xf32>
    %7 = arith.maximumf %5, %6 : vector<32x128xf32>
    %c0_6 = arith.constant 0 : index
    %c0_7 = arith.constant 0 : index
    %8 = vector.load %arg5[%c0_6, %c0_7] : memref<32x128xf32, #tpu.memory_space<vmem>>, vector<32x128xf32>
    tpu.vector_store %arg5[%c0_6, %c0_7], %7 {strides = array<i32>} : memref<32x128xf32, #tpu.memory_space<vmem>>, vector<32x128xf32>,
    return
  }
  func.func @transform_0(%arg0: i32, %arg1: i32) -> (i32, i32) {
    %c0_i32 = arith.constant 0 : i32
    %c0_i32_0 = arith.constant 0 : i32
    return %arg0, %c0_i32 : i32, i32
  }
  func.func @transform_1(%arg0: i32, %arg1: i32) -> (i32, i32) {
    %c0_i32 = arith.constant 0 : i32
    %c0_i32_0 = arith.constant 0 : i32
    return %c0_i32, %arg1 : i32, i32
  }
  func.func @transform_2(%arg0: i32, %arg1: i32) -> (i32, i32) {
    %c0_i32 = arith.constant 0 : i32
    %c0_i32_0 = arith.constant 0 : i32
    return %c0_i32, %arg1 : i32, i32
  }
  func.func @transform_3(%arg0: i32, %arg1: i32) -> (i32, i32) {
    %c0_i32 = arith.constant 0 : i32
    return %arg0, %arg1 : i32, i32
  }
}

module attributes {stable_mosaic.version = 11 : i64} {
  func.func @_matmul_bias_act_kernel(%arg0: i32, %arg1: i32, %arg2: memref<16x128xbf16, #tpu.memory_space<vmem>>, %arg3: memref<128x128xbf16, #tpu.memory_space<vmem>>, %arg4: memref<1x128xf32, #tpu.memory_space<vmem>>, %arg5: memref<16x128xf32, #tpu.memory_space<vmem>>) attributes {dimension_semantics = [#tpu.dimension_semantics<parallel>, #tpu.dimension_semantics<parallel>], iteration_bounds = array<i64: 1, 1>, scalar_prefetch = 0 : i64, scratch_operands = 0 : i64, tpu.core_type = #tpu.core_type<tc>, window_params = [{transform_indices = @transform_0, window_bounds = array<i64: 16, 128>}, {transform_indices = @transform_1, window_bounds = array<i64: 128, 128>}, {transform_indices = @transform_2, window_bounds = array<i64: 1, 128>}, {transform_indices = @transform_3, window_bounds = array<i64: 16, 128>}]} {
    %c0 = arith.constant 0 : index
    %c0_0 = arith.constant 0 : index
    %0 = vector.load %arg2[%c0, %c0_0] : memref<16x128xbf16, #tpu.memory_space<vmem>>, vector<16x128xbf16>
    %c0_1 = arith.constant 0 : index
    %c0_2 = arith.constant 0 : index
    %1 = vector.load %arg3[%c0_1, %c0_2] : memref<128x128xbf16, #tpu.memory_space<vmem>>, vector<128x128xbf16>
    %cst = arith.constant dense<0.000000e+00> : vector<16x128xf32>
    %2 = tpu.matmul %0, %1, %cst {dimension_numbers = #tpu.dot_dimension_numbers<[1], [0], [0], [1], [0, 0, 1, 1], [], []>} : vector<16x128xbf16>, vector<128x128xbf16>, vector<16x128xf32> -> vector<16x128xf32>
    %c0_3 = arith.constant 0 : index
    %c0_4 = arith.constant 0 : index
    %3 = vector.load %arg4[%c0_3, %c0_4] : memref<1x128xf32, #tpu.memory_space<vmem>>, vector<1x128xf32>
    %4 = vector.broadcast %3 : vector<1x128xf32> to vector<16x128xf32>
    %5 = arith.addf %2, %4 : vector<16x128xf32>
    %cst_5 = arith.constant 0.000000e+00 : f32
    %6 = vector.broadcast %cst_5 : f32 to vector<16x128xf32>
    %7 = arith.maximumf %5, %6 : vector<16x128xf32>
    %c0_6 = arith.constant 0 : index
    %c0_7 = arith.constant 0 : index
    %8 = vector.load %arg5[%c0_6, %c0_7] : memref<16x128xf32, #tpu.memory_space<vmem>>, vector<16x128xf32>
    tpu.vector_store %arg5[%c0_6, %c0_7], %7 {strides = array<i32>} : memref<16x128xf32, #tpu.memory_space<vmem>>, vector<16x128xf32>,
    return
  }
  func.func @transform_0(%arg0: i32, %arg1: i32) -> (i32, i32) {
    %c0_i32 = arith.constant 0 : i32
    %c0_i32_0 = arith.constant 0 : i32
    return %arg0, %c0_i32 : i32, i32
  }
  func.func @transform_1(%arg0: i32, %arg1: i32) -> (i32, i32) {
    %c0_i32 = arith.constant 0 : i32
    %c0_i32_0 = arith.constant 0 : i32
    return %c0_i32, %arg1 : i32, i32
  }
  func.func @transform_2(%arg0: i32, %arg1: i32) -> (i32, i32) {
    %c0_i32 = arith.constant 0 : i32
    %c0_i32_0 = arith.constant 0 : i32
    return %c0_i32, %arg1 : i32, i32
  }
  func.func @transform_3(%arg0: i32, %arg1: i32) -> (i32, i32) {
    %c0_i32 = arith.constant 0 : i32
    return %arg0, %arg1 : i32, i32
  }
}

module attributes {stable_mosaic.version = 11 : i64} {
  func.func @_matmul_bias_act_kernel(%arg0: i32, %arg1: i32, %arg2: memref<16x32xbf16, #tpu.memory_space<vmem>>, %arg3: memref<32x128xbf16, #tpu.memory_space<vmem>>, %arg4: memref<1x128xf32, #tpu.memory_space<vmem>>, %arg5: memref<16x128xf32, #tpu.memory_space<vmem>>) attributes {dimension_semantics = [#tpu.dimension_semantics<parallel>, #tpu.dimension_semantics<parallel>], iteration_bounds = array<i64: 1, 1>, scalar_prefetch = 0 : i64, scratch_operands = 0 : i64, tpu.core_type = #tpu.core_type<tc>, window_params = [{transform_indices = @transform_0, window_bounds = array<i64: 16, 32>}, {transform_indices = @transform_1, window_bounds = array<i64: 32, 128>}, {transform_indices = @transform_2, window_bounds = array<i64: 1, 128>}, {transform_indices = @transform_3, window_bounds = array<i64: 16, 128>}]} {
    %c0 = arith.constant 0 : index
    %c0_0 = arith.constant 0 : index
    %0 = vector.load %arg2[%c0, %c0_0] : memref<16x32xbf16, #tpu.memory_space<vmem>>, vector<16x32xbf16>
    %c0_1 = arith.constant 0 : index
    %c0_2 = arith.constant 0 : index
    %1 = vector.load %arg3[%c0_1, %c0_2] : memref<32x128xbf16, #tpu.memory_space<vmem>>, vector<32x128xbf16>
    %cst = arith.constant dense<0.000000e+00> : vector<16x128xf32>
    %2 = tpu.matmul %0, %1, %cst {dimension_numbers = #tpu.dot_dimension_numbers<[1], [0], [0], [1], [0, 0, 1, 1], [], []>} : vector<16x32xbf16>, vector<32x128xbf16>, vector<16x128xf32> -> vector<16x128xf32>
    %c0_3 = arith.constant 0 : index
    %c0_4 = arith.constant 0 : index
    %3 = vector.load %arg4[%c0_3, %c0_4] : memref<1x128xf32, #tpu.memory_space<vmem>>, vector<1x128xf32>
    %4 = vector.broadcast %3 : vector<1x128xf32> to vector<16x128xf32>
    %5 = arith.addf %2, %4 : vector<16x128xf32>
    %c0_5 = arith.constant 0 : index
    %c0_6 = arith.constant 0 : index
    %6 = vector.load %arg5[%c0_5, %c0_6] : memref<16x128xf32, #tpu.memory_space<vmem>>, vector<16x128xf32>
    tpu.vector_store %arg5[%c0_5, %c0_6], %5 {strides = array<i32>} : memref<16x128xf32, #tpu.memory_space<vmem>>, vector<16x128xf32>,
    return
  }
  func.func @transform_0(%arg0: i32, %arg1: i32) -> (i32, i32) {
    %c0_i32 = arith.constant 0 : i32
    %c0_i32_0 = arith.constant 0 : i32
    return %arg0, %c0_i32 : i32, i32
  }
  func.func @transform_1(%arg0: i32, %arg1: i32) -> (i32, i32) {
    %c0_i32 = arith.constant 0 : i32
    %c0_i32_0 = arith.constant 0 : i32
    return %c0_i32, %arg1 : i32, i32
  }
  func.func @transform_2(%arg0: i32, %arg1: i32) -> (i32, i32) {
    %c0_i32 = arith.constant 0 : i32
    %c0_i32_0 = arith.constant 0 : i32
    return %c0_i32, %arg1 : i32, i32
  }
  func.func @transform_3(%arg0: i32, %arg1: i32) -> (i32, i32) {
    %c0_i32 = arith.constant 0 : i32
    return %arg0, %arg1 : i32, i32
  }
}

</mosaic_0001>

<bundles_post_ra>
// kernel: forward.6
= control target key start
LH: loop header
LB: loop body
LE: loop exit
PB: predicated region body
PF: predicated region fallthrough
CT: control target
= control target key end

     0   :  { %s1256_s12 = smov 0   ;;  %s1258_s13 = smov 0   ;;  %s1500_s0 = inlined_call_operand.vmem [shape: bf16[2048,32], index: 0, kind: input, shape index: {}]   ;;  %s1501_s1 = inlined_call_operand.vmem [shape: bf16[32,128], index: 1, kind: input, shape index: {}]   ;;  %s1502_s2 = inlined_call_operand.vmem [shape: f32[1,128], index: 2, kind: input, shape index: {}]   ;;  %s1503_s3 = inlined_call_operand.vmem [shape: f32[2048,128], index: 3, kind: output, shape index: {}]  }
   0x1   :  { %s1260_s14 = smov 0  }
   0x2 LB: > { %s25_s15 = sadd.s32 1, %s1230_s13  ;;  %p972_p0 = scmp.ge.s32.totalorder %s1234_s14, 1  ;;  %s1234_s14 = sphi %s1260_s14, %s13_s14   ;;  %s1230_s13 = sphi %s1258_s13, %s1505_s13   ;;  %s1226_s12 = sphi %s1256_s12, %s1504_s12  }
   0x3   : > { %p27_p1 = scmp.ge.s32.totalorder %s25_s15, 4  ;;  %p169_p2 = scmp.lt.s32.totalorder %s1234_s14, 5 }
   0x5   : > { %s1507_s15 = smov (%p27_p1, %s25_s15), 0  ;;  %p170_p3 = pnand %p972_p0, %p169_p2 }
   0x6   : > { %s973_s18 = sshll.u32 (!%p170_p3), %s1226_s12, 6 }
   0x7   : > { %173 = sbr.rel (%p170_p3) target bundleno = 279 (0x117), region = 32  ;;  %p204_p4 = scmp.lt.s32.totalorder (!%p170_p3), %s973_s18, 255 }
   0xc   : > { %v1180_v0 = vld [vmem:[%s1501_s1 + $0x8] sm:$0xff]  ;;  %v1179_v1 = vld [vmem:[%s1501_s1] sm:$0xff]  ;;  %s1509_s18 = smov (!%p204_p4, %s973_s18), 255  ;;  %vm470_vm0 = vcmask 261120  }
   0xd   : > { %573 = vmatpush.bf16.msra.mxu0 %v1180_v0  ;;  %1181 = vmatpush.bf16.msra.mxu1 %v1180_v0  ;;  %s974_s21 = sshll.u32 %s1509_s18, 2  ;;  %v1355_v34 = vld [vmem:[%s1502_s2] ss:$0 sm:$0xff]  ;;  %s976_s27 = sshll.u32 %s1509_s18, 3 }
   0xe   : > { %1182 = vmatpush.bf16.msra.mxu2 %v1180_v0  ;;  %1183 = vmatpush.bf16.msra.mxu3 %v1180_v0  ;;  %s1286_s24 = scalar_lea.vmem %s1500_s0, %s974_s21  ;;  %s1363_s30 = scalar_lea.vmem %s1503_s3, %s976_s27 }
   0xf   : > { %v1147_v2 = vld [vmem:[%s1286_s24] sm:$0xff]  ;;  %v1148_v6 = vld [vmem:[%s1286_s24 + $0x8] sm:$0xff]  ;;  %v1149_v10 = vld [vmem:[%s1286_s24 + $0x10] sm:$0xff] }
  0x10   : > { %v1155_v3 = vld [vmem:[%s1286_s24 + $0x40] sm:$0xff]  ;;  %v1156_v7 = vld [vmem:[%s1286_s24 + $0x48] sm:$0xff]  ;;  %v1157_v11 = vld [vmem:[%s1286_s24 + $0x50] sm:$0xff] }
  0x11   : > { %574 = vmatpush.bf16.msra.mxu0 %v1179_v1  ;;  %1184 = vmatpush.bf16.msra.mxu1 %v1179_v1  ;;  %v1163_v4 = vld [vmem:[%s1286_s24 + $0x80] sm:$0xff]  ;;  %v1164_v8 = vld [vmem:[%s1286_s24 + $0x88] sm:$0xff]  ;;  %v1165_v12 = vld [vmem:[%s1286_s24 + $0x90] sm:$0xff] }
  0x12   : > { %1185 = vmatpush.bf16.msra.mxu2 %v1179_v1  ;;  %1186 = vmatpush.bf16.msra.mxu3 %v1179_v1  ;;  %v1171_v5 = vld [vmem:[%s1286_s24 + $0xc0] sm:$0xff]  ;;  %v1172_v9 = vld [vmem:[%s1286_s24 + $0xc8] sm:$0xff]  ;;  %v1173_v13 = vld [vmem:[%s1286_s24 + $0xd0] sm:$0xff] }
  0x13   : > { %v1150_v14 = vld [vmem:[%s1286_s24 + $0x18] sm:$0xff]  ;;  %v1151_v18 = vld [vmem:[%s1286_s24 + $0x20] sm:$0xff]  ;;  %v1152_v22 = vld [vmem:[%s1286_s24 + $0x28] sm:$0xff] }
  0x14   : > { %1113 = vmatmul.msk.bf16.vlgmr.msra.gmra.mxu0 %vm470_vm0, %v1147_v2  ;;  %1121 = vmatmul.msk.bf16.vlgmr.msra.gmra.mxu1 %vm470_vm0, %v1155_v3  ;;  %v1158_v15 = vld [vmem:[%s1286_s24 + $0x58] sm:$0xff]  ;;  %v1159_v19 = vld [vmem:[%s1286_s24 + $0x60] sm:$0xff]  ;;  %v1160_v23 = vld [vmem:[%s1286_s24 + $0x68] sm:$0xff] }
  0x15   : > { %1129 = vmatmul.msk.bf16.vlgmr.msra.gmra.mxu2 %vm470_vm0, %v1163_v4  ;;  %1137 = vmatmul.msk.bf16.vlgmr.msra.gmra.mxu3 %vm470_vm0, %v1171_v5  ;;  %v1166_v16 = vld [vmem:[%s1286_s24 + $0x98] sm:$0xff]  ;;  %v1167_v20 = vld [vmem:[%s1286_s24 + $0xa0] sm:$0xff]  ;;  %v1168_v24 = vld [vmem:[%s1286_s24 + $0xa8] sm:$0xff] }
  0x16   : > { %v1174_v17 = vld [vmem:[%s1286_s24 + $0xd8] sm:$0xff]  ;;  %v1175_v21 = vld [vmem:[%s1286_s24 + $0xe0] sm:$0xff]  ;;  %v1176_v25 = vld [vmem:[%s1286_s24 + $0xe8] sm:$0xff] }
  0x17   : > { %v1153_v26 = vld [vmem:[%s1286_s24 + $0x30] sm:$0xff]  ;;  %v1154_v30 = vld [vmem:[%s1286_s24 + $0x38] sm:$0xff] }
  0x18   : > { %v1161_v27 = vld [vmem:[%s1286_s24 + $0x70] sm:$0xff]  ;;  %v1162_v31 = vld [vmem:[%s1286_s24 + $0x78] sm:$0xff] }
  0x19   : > { %v1169_v28 = vld [vmem:[%s1286_s24 + $0xb0] sm:$0xff]  ;;  %v1170_v32 = vld [vmem:[%s1286_s24 + $0xb8] sm:$0xff] }
  0x1a   : > { %v1177_v29 = vld [vmem:[%s1286_s24 + $0xf0] sm:$0xff]  ;;  %v1178_v33 = vld [vmem:[%s1286_s24 + $0xf8] sm:$0xff] }
  0x24   : > { %1114 = vmatmul.msk.bf16.gmra.mxu0 %vm470_vm0, %v1148_v6  ;;  %1122 = vmatmul.msk.bf16.gmra.mxu1 %vm470_vm0, %v1156_v7 }
  0x25   : > { %1130 = vmatmul.msk.bf16.gmra.mxu2 %vm470_vm0, %v1164_v8  ;;  %1138 = vmatmul.msk.bf16.gmra.mxu3 %vm470_vm0, %v1172_v9 }
  0x34   : > { %1115 = vmatmul.msk.bf16.gmra.mxu0 %vm470_vm0, %v1149_v10  ;;  %1123 = vmatmul.msk.bf16.gmra.mxu1 %vm470_vm0, %v1157_v11 }
  0x35   : > { %1131 = vmatmul.msk.bf16.gmra.mxu2 %vm470_vm0, %v1165_v12  ;;  %1139 = vmatmul.msk.bf16.gmra.mxu3 %vm470_vm0, %v1173_v13 }
  0x44   : > { %1116 = vmatmul.msk.bf16.gmra.mxu0 %vm470_vm0, %v1150_v14  ;;  %1124 = vmatmul.msk.bf16.gmra.mxu1 %vm470_vm0, %v1158_v15 }
  0x45   : > { %1132 = vmatmul.msk.bf16.gmra.mxu2 %vm470_vm0, %v1166_v16  ;;  %1140 = vmatmul.msk.bf16.gmra.mxu3 %vm470_vm0, %v1174_v17 }
  0x54   : > { %1117 = vmatmul.msk.bf16.gmra.mxu0 %vm470_vm0, %v1151_v18  ;;  %1125 = vmatmul.msk.bf16.gmra.mxu1 %vm470_vm0, %v1159_v19 }
  0x55   : > { %1133 = vmatmul.msk.bf16.gmra.mxu2 %vm470_vm0, %v1167_v20  ;;  %1141 = vmatmul.msk.bf16.gmra.mxu3 %vm470_vm0, %v1175_v21 }
  0x64   : > { %1118 = vmatmul.msk.bf16.gmra.mxu0 %vm470_vm0, %v1152_v22  ;;  %1126 = vmatmul.msk.bf16.gmra.mxu1 %vm470_vm0, %v1160_v23 }
  0x65   : > { %1134 = vmatmul.msk.bf16.gmra.mxu2 %vm470_vm0, %v1168_v24  ;;  %1142 = vmatmul.msk.bf16.gmra.mxu3 %vm470_vm0, %v1176_v25 }
  0x74   : > { %1119 = vmatmul.msk.bf16.gmra.mxu0 %vm470_vm0, %v1153_v26  ;;  %1127 = vmatmul.msk.bf16.gmra.mxu1 %vm470_vm0, %v1161_v27 }
  0x75   : > { %1135 = vmatmul.msk.bf16.gmra.mxu2 %vm470_vm0, %v1169_v28  ;;  %1143 = vmatmul.msk.bf16.gmra.mxu3 %vm470_vm0, %v1177_v29 }
  0x84   : > { %1120 = vmatmul.msk.bf16.gmra.mxu0 %vm470_vm0, %v1154_v30  ;;  %1128 = vmatmul.msk.bf16.gmra.mxu1 %vm470_vm0, %v1162_v31 }
  0x85   : > { %1136 = vmatmul.msk.bf16.gmra.mxu2 %vm470_vm0, %v1170_v32  ;;  %1144 = vmatmul.msk.bf16.gmra.mxu3 %vm470_vm0, %v1178_v33 }
  0x91   : > { %v576_v35 = vpop.f32.mrf.mxu0  ;;  %v616_v36 = vpop.f32.mrf.mxu1 }
  0x92   : > { %v577_v37 = vadd.f32 %v1355_v34, %v576_v35  ;;  %v617_v38 = vadd.f32 %v1355_v34, %v616_v36 }
  0x94   : > { %v736_v39 = vmax.f32 %v577_v37, 0.0  ;;  %v752_v40 = vmax.f32 %v617_v38, 0.0 }
  0x96   : > { %800 = vst [vmem:[%s1363_s30] sm:$0xff] %v736_v39 }
  0x97   : > { %816 = vst [vmem:[%s1363_s30 + $0x80] sm:$0xff] %v752_v40 }
  0x98   : > { %v656_v41 = vpop.f32.mrf.mxu2  ;;  %v696_v42 = vpop.f32.mrf.mxu3 }
  0x99   : > { %v657_v43 = vadd.f32 %v1355_v34, %v656_v41  ;;  %v697_v44 = vadd.f32 %v1355_v34, %v696_v42  ;;  %v578_v45 = vpop.f32.mrf.mxu0  ;;  %v618_v46 = vpop.f32.mrf.mxu1 }
  0x9a   : > { %v579_v47 = vadd.f32 %v1355_v34, %v578_v45  ;;  %v619_v48 = vadd.f32 %v1355_v34, %v618_v46 }
  0x9b   : > { %v768_v49 = vmax.f32 %v657_v43, 0.0  ;;  %v784_v50 = vmax.f32 %v697_v44, 0.0 }
  0x9c   : > { %v737_v51 = vmax.f32 %v579_v47, 0.0  ;;  %v753_v52 = vmax.f32 %v619_v48, 0.0 }
  0x9d   : > { %832 = vst [vmem:[%s1363_s30 + $0x100] sm:$0xff] %v768_v49 }
  0x9e   : > { %848 = vst [vmem:[%s1363_s30 + $0x180] sm:$0xff] %v784_v50 }
  0x9f   : > { %801 = vst [vmem:[%s1363_s30 + $0x8] sm:$0xff] %v737_v51 }
  0xa0   : > { %817 = vst [vmem:[%s1363_s30 + $0x88] sm:$0xff] %v753_v52  ;;  %v658_v53 = vpop.f32.mrf.mxu2  ;;  %v698_v54 = vpop.f32.mrf.mxu3 }
  0xa1   : > { %v659_v55 = vadd.f32 %v1355_v34, %v658_v53  ;;  %v699_v56 = vadd.f32 %v1355_v34, %v698_v54  ;;  %v581_v57 = vpop.f32.mrf.mxu0  ;;  %v621_v58 = vpop.f32.mrf.mxu1 }
  0xa2   : > { %v582_v59 = vadd.f32 %v1355_v34, %v581_v57  ;;  %v622_v60 = vadd.f32 %v1355_v34, %v621_v58 }
  0xa3   : > { %v769_v61 = vmax.f32 %v659_v55, 0.0  ;;  %v785_v62 = vmax.f32 %v699_v56, 0.0 }
  0xa4   : > { %v738_v63 = vmax.f32 %v582_v59, 0.0  ;;  %v754_v0 = vmax.f32 %v622_v60, 0.0 }
  0xa5   : > { %833 = vst [vmem:[%s1363_s30 + $0x108] sm:$0xff] %v769_v61 }
  0xa6   : > { %849 = vst [vmem:[%s1363_s30 + $0x188] sm:$0xff] %v785_v62 }
  0xa7   : > { %802 = vst [vmem:[%s1363_s30 + $0x10] sm:$0xff] %v738_v63 }
  0xa8   : > { %818 = vst [vmem:[%s1363_s30 + $0x90] sm:$0xff] %v754_v0  ;;  %v661_v1 = vpop.f32.mrf.mxu2  ;;  %v701_v2 = vpop.f32.mrf.mxu3 }
  0xa9   : > { %v662_v3 = vadd.f32 %v1355_v34, %v661_v1  ;;  %v702_v4 = vadd.f32 %v1355_v34, %v701_v2  ;;  %v583_v5 = vpop.f32.mrf.mxu0  ;;  %v623_v6 = vpop.f32.mrf.mxu1 }
  0xaa   : > { %v584_v7 = vadd.f32 %v1355_v34, %v583_v5  ;;  %v624_v8 = vadd.f32 %v1355_v34, %v623_v6 }
  0xab   : > { %v770_v9 = vmax.f32 %v662_v3, 0.0  ;;  %v786_v10 = vmax.f32 %v702_v4, 0.0 }
  0xac   : > { %v739_v11 = vmax.f32 %v584_v7, 0.0  ;;  %v755_v12 = vmax.f32 %v624_v8, 0.0 }
  0xad   : > { %834 = vst [vmem:[%s1363_s30 + $0x110] sm:$0xff] %v770_v9 }
  0xae   : > { %850 = vst [vmem:[%s1363_s30 + $0x190] sm:$0xff] %v786_v10 }
  0xaf   : > { %803 = vst [vmem:[%s1363_s30 + $0x18] sm:$0xff] %v739_v11 }
  0xb0   : > { %819 = vst [vmem:[%s1363_s30 + $0x98] sm:$0xff] %v755_v12  ;;  %v663_v13 = vpop.f32.mrf.mxu2  ;;  %v703_v14 = vpop.f32.mrf.mxu3 }
  0xb1   : > { %v664_v15 = vadd.f32 %v1355_v34, %v663_v13  ;;  %v704_v16 = vadd.f32 %v1355_v34, %v703_v14  ;;  %v586_v17 = vpop.f32.mrf.mxu0  ;;  %v626_v18 = vpop.f32.mrf.mxu1 }
  0xb2   : > { %v587_v19 = vadd.f32 %v1355_v34, %v586_v17  ;;  %v627_v20 = vadd.f32 %v1355_v34, %v626_v18 }
  0xb3   : > { %v771_v21 = vmax.f32 %v664_v15, 0.0  ;;  %v787_v22 = vmax.f32 %v704_v16, 0.0 }
  0xb4   : > { %v740_v23 = vmax.f32 %v587_v19, 0.0  ;;  %v756_v24 = vmax.f32 %v627_v20, 0.0 }
  0xb5   : > { %835 = vst [vmem:[%s1363_s30 + $0x118] sm:$0xff] %v771_v21 }
  0xb6   : > { %851 = vst [vmem:[%s1363_s30 + $0x198] sm:$0xff] %v787_v22 }
  0xb7   : > { %804 = vst [vmem:[%s1363_s30 + $0x20] sm:$0xff] %v740_v23 }
  0xb8   : > { %820 = vst [vmem:[%s1363_s30 + $0xa0] sm:$0xff] %v756_v24  ;;  %v666_v25 = vpop.f32.mrf.mxu2  ;;  %v706_v26 = vpop.f32.mrf.mxu3 }
  0xb9   : > { %v667_v27 = vadd.f32 %v1355_v34, %v666_v25  ;;  %v707_v28 = vadd.f32 %v1355_v34, %v706_v26  ;;  %v588_v29 = vpop.f32.mrf.mxu0  ;;  %v628_v30 = vpop.f32.mrf.mxu1 }
  0xba   : > { %v589_v31 = vadd.f32 %v1355_v34, %v588_v29  ;;  %v629_v32 = vadd.f32 %v1355_v34, %v628_v30 }
  0xbb   : > { %v772_v33 = vmax.f32 %v667_v27, 0.0  ;;  %v788_v35 = vmax.f32 %v707_v28, 0.0 }
  0xbc   : > { %v741_v36 = vmax.f32 %v589_v31, 0.0  ;;  %v757_v37 = vmax.f32 %v629_v32, 0.0 }
  0xbd   : > { %836 = vst [vmem:[%s1363_s30 + $0x120] sm:$0xff] %v772_v33 }
  0xbe   : > { %852 = vst [vmem:[%s1363_s30 + $0x1a0] sm:$0xff] %v788_v35 }
  0xbf   : > { %805 = vst [vmem:[%s1363_s30 + $0x28] sm:$0xff] %v741_v36 }
  0xc0   : > { %821 = vst [vmem:[%s1363_s30 + $0xa8] sm:$0xff] %v757_v37  ;;  %v668_v38 = vpop.f32.mrf.mxu2  ;;  %v708_v39 = vpop.f32.mrf.mxu3 }
  0xc1   : > { %v669_v40 = vadd.f32 %v1355_v34, %v668_v38  ;;  %v709_v41 = vadd.f32 %v1355_v34, %v708_v39  ;;  %v591_v42 = vpop.f32.mrf.mxu0  ;;  %v631_v43 = vpop.f32.mrf.mxu1 }
  0xc2   : > { %v592_v44 = vadd.f32 %v1355_v34, %v591_v42  ;;  %v632_v45 = vadd.f32 %v1355_v34, %v631_v43 }
  0xc3   : > { %v773_v46 = vmax.f32 %v669_v40, 0.0  ;;  %v789_v47 = vmax.f32 %v709_v41, 0.0 }
  0xc4   : > { %v742_v48 = vmax.f32 %v592_v44, 0.0  ;;  %v758_v49 = vmax.f32 %v632_v45, 0.0 }
  0xc5   : > { %837 = vst [vmem:[%s1363_s30 + $0x128] sm:$0xff] %v773_v46 }
  0xc6   : > { %853 = vst [vmem:[%s1363_s30 + $0x1a8] sm:$0xff] %v789_v47 }
  0xc7   : > { %806 = vst [vmem:[%s1363_s30 + $0x30] sm:$0xff] %v742_v48 }
  0xc8   : > { %822 = vst [vmem:[%s1363_s30 + $0xb0] sm:$0xff] %v758_v49  ;;  %v671_v50 = vpop.f32.mrf.mxu2  ;;  %v711_v51 = vpop.f32.mrf.mxu3 }
  0xc9   : > { %v672_v52 = vadd.f32 %v1355_v34, %v671_v50  ;;  %v712_v53 = vadd.f32 %v1355_v34, %v711_v51  ;;  %v593_v54 = vpop.f32.mrf.mxu0  ;;  %v633_v55 = vpop.f32.mrf.mxu1 }
  0xca   : > { %v594_v56 = vadd.f32 %v1355_v34, %v593_v54  ;;  %v634_v57 = vadd.f32 %v1355_v34, %v633_v55 }
  0xcb   : > { %v774_v58 = vmax.f32 %v672_v52, 0.0  ;;  %v790_v59 = vmax.f32 %v712_v53, 0.0 }
  0xcc   : > { %v743_v60 = vmax.f32 %v594_v56, 0.0  ;;  %v759_v61 = vmax.f32 %v634_v57, 0.0 }
  0xcd   : > { %838 = vst [vmem:[%s1363_s30 + $0x130] sm:$0xff] %v774_v58 }
  0xce   : > { %854 = vst [vmem:[%s1363_s30 + $0x1b0] sm:$0xff] %v790_v59 }
  0xcf   : > { %807 = vst [vmem:[%s1363_s30 + $0x38] sm:$0xff] %v743_v60 }
  0xd0   : > { %823 = vst [vmem:[%s1363_s30 + $0xb8] sm:$0xff] %v759_v61  ;;  %v673_v62 = vpop.f32.mrf.mxu2  ;;  %v713_v63 = vpop.f32.mrf.mxu3 }
  0xd1   : > { %v674_v0 = vadd.f32 %v1355_v34, %v673_v62  ;;  %v714_v1 = vadd.f32 %v1355_v34, %v713_v63  ;;  %v596_v2 = vpop.f32.mrf.mxu0  ;;  %v636_v3 = vpop.f32.mrf.mxu1 }
  0xd2   : > { %v597_v4 = vadd.f32 %v1355_v34, %v596_v2  ;;  %v637_v5 = vadd.f32 %v1355_v34, %v636_v3 }
  0xd3   : > { %v775_v6 = vmax.f32 %v674_v0, 0.0  ;;  %v791_v7 = vmax.f32 %v714_v1, 0.0 }
  0xd4   : > { %v744_v8 = vmax.f32 %v597_v4, 0.0  ;;  %v760_v9 = vmax.f32 %v637_v5, 0.0 }
  0xd5   : > { %839 = vst [vmem:[%s1363_s30 + $0x138] sm:$0xff] %v775_v6 }
  0xd6   : > { %855 = vst [vmem:[%s1363_s30 + $0x1b8] sm:$0xff] %v791_v7 }
  0xd7   : > { %808 = vst [vmem:[%s1363_s30 + $0x40] sm:$0xff] %v744_v8 }
  0xd8   : > { %824 = vst [vmem:[%s1363_s30 + $0xc0] sm:$0xff] %v760_v9  ;;  %v676_v10 = vpop.f32.mrf.mxu2  ;;  %v716_v11 = vpop.f32.mrf.mxu3 }
  0xd9   : > { %v677_v12 = vadd.f32 %v1355_v34, %v676_v10  ;;  %v717_v13 = vadd.f32 %v1355_v34, %v716_v11  ;;  %v598_v14 = vpop.f32.mrf.mxu0  ;;  %v638_v15 = vpop.f32.mrf.mxu1 }
  0xda   : > { %v599_v16 = vadd.f32 %v1355_v34, %v598_v14  ;;  %v639_v17 = vadd.f32 %v1355_v34, %v638_v15 }
  0xdb   : > { %v776_v18 = vmax.f32 %v677_v12, 0.0  ;;  %v792_v19 = vmax.f32 %v717_v13, 0.0 }
  0xdc   : > { %v745_v20 = vmax.f32 %v599_v16, 0.0  ;;  %v761_v21 = vmax.f32 %v639_v17, 0.0 }
  0xdd   : > { %840 = vst [vmem:[%s1363_s30 + $0x140] sm:$0xff] %v776_v18 }
  0xde   : > { %856 = vst [vmem:[%s1363_s30 + $0x1c0] sm:$0xff] %v792_v19 }
  0xdf   : > { %809 = vst [vmem:[%s1363_s30 + $0x48] sm:$0xff] %v745_v20 }
  0xe0   : > { %825 = vst [vmem:[%s1363_s30 + $0xc8] sm:$0xff] %v761_v21  ;;  %v678_v22 = vpop.f32.mrf.mxu2  ;;  %v718_v23 = vpop.f32.mrf.mxu3 }
  0xe1   : > { %v679_v24 = vadd.f32 %v1355_v34, %v678_v22  ;;  %v719_v25 = vadd.f32 %v1355_v34, %v718_v23  ;;  %v601_v26 = vpop.f32.mrf.mxu0  ;;  %v641_v27 = vpop.f32.mrf.mxu1 }
  0xe2   : > { %v602_v28 = vadd.f32 %v1355_v34, %v601_v26  ;;  %v642_v29 = vadd.f32 %v1355_v34, %v641_v27 }
  0xe3   : > { %v777_v30 = vmax.f32 %v679_v24, 0.0  ;;  %v793_v31 = vmax.f32 %v719_v25, 0.0 }
  0xe4   : > { %v746_v32 = vmax.f32 %v602_v28, 0.0  ;;  %v762_v33 = vmax.f32 %v642_v29, 0.0 }
  0xe5   : > { %841 = vst [vmem:[%s1363_s30 + $0x148] sm:$0xff] %v777_v30 }
  0xe6   : > { %857 = vst [vmem:[%s1363_s30 + $0x1c8] sm:$0xff] %v793_v31 }
  0xe7   : > { %810 = vst [vmem:[%s1363_s30 + $0x50] sm:$0xff] %v746_v32 }
  0xe8   : > { %826 = vst [vmem:[%s1363_s30 + $0xd0] sm:$0xff] %v762_v33  ;;  %v681_v35 = vpop.f32.mrf.mxu2  ;;  %v721_v36 = vpop.f32.mrf.mxu3 }
  0xe9   : > { %v682_v37 = vadd.f32 %v1355_v34, %v681_v35  ;;  %v722_v38 = vadd.f32 %v1355_v34, %v721_v36  ;;  %v603_v39 = vpop.f32.mrf.mxu0  ;;  %v643_v40 = vpop.f32.mrf.mxu1 }
  0xea   : > { %v604_v41 = vadd.f32 %v1355_v34, %v603_v39  ;;  %v644_v42 = vadd.f32 %v1355_v34, %v643_v40 }
  0xeb   : > { %v778_v43 = vmax.f32 %v682_v37, 0.0  ;;  %v794_v44 = vmax.f32 %v722_v38, 0.0 }
  0xec   : > { %v747_v45 = vmax.f32 %v604_v41, 0.0  ;;  %v763_v46 = vmax.f32 %v644_v42, 0.0 }
  0xed   : > { %842 = vst [vmem:[%s1363_s30 + $0x150] sm:$0xff] %v778_v43 }
  0xee   : > { %858 = vst [vmem:[%s1363_s30 + $0x1d0] sm:$0xff] %v794_v44 }
  0xef   : > { %811 = vst [vmem:[%s1363_s30 + $0x58] sm:$0xff] %v747_v45 }
  0xf0   : > { %827 = vst [vmem:[%s1363_s30 + $0xd8] sm:$0xff] %v763_v46  ;;  %v683_v47 = vpop.f32.mrf.mxu2  ;;  %v723_v48 = vpop.f32.mrf.mxu3 }
  0xf1   : > { %v684_v49 = vadd.f32 %v1355_v34, %v683_v47  ;;  %v724_v50 = vadd.f32 %v1355_v34, %v723_v48  ;;  %v606_v51 = vpop.f32.mrf.mxu0  ;;  %v646_v52 = vpop.f32.mrf.mxu1 }
  0xf2   : > { %v607_v53 = vadd.f32 %v1355_v34, %v606_v51  ;;  %v647_v54 = vadd.f32 %v1355_v34, %v646_v52 }
  0xf3   : > { %v779_v55 = vmax.f32 %v684_v49, 0.0  ;;  %v795_v56 = vmax.f32 %v724_v50, 0.0 }
  0xf4   : > { %v748_v57 = vmax.f32 %v607_v53, 0.0  ;;  %v764_v58 = vmax.f32 %v647_v54, 0.0 }
  0xf5   : > { %843 = vst [vmem:[%s1363_s30 + $0x158] sm:$0xff] %v779_v55 }
  0xf6   : > { %859 = vst [vmem:[%s1363_s30 + $0x1d8] sm:$0xff] %v795_v56 }
  0xf7   : > { %812 = vst [vmem:[%s1363_s30 + $0x60] sm:$0xff] %v748_v57 }
  0xf8   : > { %828 = vst [vmem:[%s1363_s30 + $0xe0] sm:$0xff] %v764_v58  ;;  %v686_v59 = vpop.f32.mrf.mxu2  ;;  %v726_v60 = vpop.f32.mrf.mxu3 }
  0xf9   : > { %v687_v61 = vadd.f32 %v1355_v34, %v686_v59  ;;  %v727_v62 = vadd.f32 %v1355_v34, %v726_v60  ;;  %v608_v63 = vpop.f32.mrf.mxu0  ;;  %v648_v0 = vpop.f32.mrf.mxu1 }
  0xfa   : > { %v609_v1 = vadd.f32 %v1355_v34, %v608_v63  ;;  %v649_v2 = vadd.f32 %v1355_v34, %v648_v0 }
  0xfb   : > { %v780_v3 = vmax.f32 %v687_v61, 0.0  ;;  %v796_v4 = vmax.f32 %v727_v62, 0.0 }
  0xfc   : > { %v749_v5 = vmax.f32 %v609_v1, 0.0  ;;  %v765_v6 = vmax.f32 %v649_v2, 0.0 }
  0xfd   : > { %844 = vst [vmem:[%s1363_s30 + $0x160] sm:$0xff] %v780_v3 }
  0xfe   : > { %860 = vst [vmem:[%s1363_s30 + $0x1e0] sm:$0xff] %v796_v4 }
  0xff   : > { %813 = vst [vmem:[%s1363_s30 + $0x68] sm:$0xff] %v749_v5 }
 0x100   : > { %829 = vst [vmem:[%s1363_s30 + $0xe8] sm:$0xff] %v765_v6  ;;  %v688_v7 = vpop.f32.mrf.mxu2  ;;  %v728_v8 = vpop.f32.mrf.mxu3 }
 0x101   : > { %v689_v9 = vadd.f32 %v1355_v34, %v688_v7  ;;  %v729_v10 = vadd.f32 %v1355_v34, %v728_v8  ;;  %v611_v11 = vpop.f32.mrf.mxu0  ;;  %v651_v12 = vpop.f32.mrf.mxu1 }
 0x102   : > { %v612_v13 = vadd.f32 %v1355_v34, %v611_v11  ;;  %v652_v14 = vadd.f32 %v1355_v34, %v651_v12 }
 0x103   : > { %v781_v15 = vmax.f32 %v689_v9, 0.0  ;;  %v797_v16 = vmax.f32 %v729_v10, 0.0 }
 0x104   : > { %v750_v17 = vmax.f32 %v612_v13, 0.0  ;;  %v766_v18 = vmax.f32 %v652_v14, 0.0 }
 0x105   : > { %845 = vst [vmem:[%s1363_s30 + $0x168] sm:$0xff] %v781_v15 }
 0x106   : > { %861 = vst [vmem:[%s1363_s30 + $0x1e8] sm:$0xff] %v797_v16 }
 0x107   : > { %814 = vst [vmem:[%s1363_s30 + $0x70] sm:$0xff] %v750_v17 }
 0x108   : > { %830 = vst [vmem:[%s1363_s30 + $0xf0] sm:$0xff] %v766_v18  ;;  %v691_v19 = vpop.f32.mrf.mxu2  ;;  %v731_v20 = vpop.f32.mrf.mxu3 }
 0x109   : > { %v692_v21 = vadd.f32 %v1355_v34, %v691_v19  ;;  %v732_v22 = vadd.f32 %v1355_v34, %v731_v20  ;;  %v613_v23 = vpop.f32.mrf.mxu0  ;;  %v653_v24 = vpop.f32.mrf.mxu1 }
 0x10a   : > { %v614_v25 = vadd.f32 %v1355_v34, %v613_v23  ;;  %v654_v26 = vadd.f32 %v1355_v34, %v653_v24 }
 0x10b   : > { %v782_v27 = vmax.f32 %v692_v21, 0.0  ;;  %v798_v28 = vmax.f32 %v732_v22, 0.0 }
 0x10c   : > { %v751_v29 = vmax.f32 %v614_v25, 0.0  ;;  %v767_v30 = vmax.f32 %v654_v26, 0.0 }
 0x10d   : > { %846 = vst [vmem:[%s1363_s30 + $0x170] sm:$0xff] %v782_v27 }
 0x10e   : > { %862 = vst [vmem:[%s1363_s30 + $0x1f0] sm:$0xff] %v798_v28 }
 0x10f   : > { %815 = vst [vmem:[%s1363_s30 + $0x78] sm:$0xff] %v751_v29 }
 0x110   : > { %831 = vst [vmem:[%s1363_s30 + $0xf8] sm:$0xff] %v767_v30  ;;  %v693_v31 = vpop.f32.mrf.mxu2  ;;  %v733_v32 = vpop.f32.mrf.mxu3 }
 0x111   : > { %v694_v33 = vadd.f32 %v1355_v34, %v693_v31  ;;  %v734_v35 = vadd.f32 %v1355_v34, %v733_v32 }
 0x113   : > { %v783_v36 = vmax.f32 %v694_v33, 0.0  ;;  %v799_v37 = vmax.f32 %v734_v35, 0.0 }
 0x115   : > { %847 = vst [vmem:[%s1363_s30 + $0x178] sm:$0xff] %v783_v36 }
 0x116   : > { %863 = vst [vmem:[%s1363_s30 + $0x1f8] sm:$0xff] %v799_v37 }
 0x117 PF: > { %s13_s14 = sadd.s32 1, %s1234_s14   ;;  %s1504_s12 = smov %s1230_s13 }
 0x118   : > { %p10_p5 = scmp.ge.s32.totalorder %s13_s14, 6   ;;  %s1505_s13 = smov %s1507_s15 }
 0x11a   :  { %12 = sbr.rel (!%p10_p5) target bundleno = 2 (0x2), region = 68 }

// kernel: forward.7
= control target key start
LH: loop header
LB: loop body
LE: loop exit
PB: predicated region body
PF: predicated region fallthrough
CT: control target
= control target key end

     0   :  { %vm443_vm0 = vcmask 130048   ;;  %s2219_s1 = inlined_call_operand.vmem [shape: bf16[144,128], index: 1, kind: input, shape index: {}]   ;;  %s2220_s0 = inlined_call_operand.vmem [shape: bf16[512,144], index: 0, kind: input, shape index: {}]   ;;  %s2221_s2 = inlined_call_operand.vmem [shape: f32[1,128], index: 2, kind: input, shape index: {}]   ;;  %s2222_s3 = inlined_call_operand.vmem [shape: f32[512,128], index: 3, kind: output, shape index: {}]  }
   0x1   :  { %v1405_v0 = vld [vmem:[%s2219_s1 + $0x38] sm:$0xff]  ;;  %v1406_v1 = vld [vmem:[%s2219_s1 + $0x40] sm:$0xff]  ;;  %v1014_v3 = vld [vmem:[%s2220_s0 + $0x8] sm:$0xf0] }
   0x2   :  { %v1334_v2 = vld [vmem:[%s2220_s0 + $0x4] sm:$0xf]  ;;  %540 = vmatpush.bf16.msra.mxu0 %v1405_v0  ;;  %1407 = vmatpush.bf16.msra.mxu2 %v1405_v0  ;;  %v1404_v5 = vld [vmem:[%s2219_s1 + $0x30] sm:$0xff]  ;;  %v1403_v6 = vld [vmem:[%s2219_s1 + $0x28] sm:$0xff] }
   0x3   :  { %v1017_v4 = vor.u32 %v1334_v2, %v1014_v3  ;;  %716 = vmatpush.bf16.msra.mxu1 %v1406_v1  ;;  %1415 = vmatpush.bf16.msra.mxu3 %v1406_v1  ;;  %v1368_v7 = vld [vmem:[%s2220_s0 + $0x114] sm:$0xf]  ;;  %v1150_v8 = vld [vmem:[%s2220_s0 + $0x118] sm:$0xf0]  ;;  %v1402_v10 = vld [vmem:[%s2219_s1 + $0x20] sm:$0xff] }
   0x4   :  { %v1153_v9 = vor.u32 %v1368_v7, %v1150_v8  ;;  %v1401_v11 = vld [vmem:[%s2219_s1 + $0x18] sm:$0xff]  ;;  %v1336_v12 = vld [vmem:[%s2220_s0 + $0x14] sm:$0xf]  ;;  %v1399_v16 = vld [vmem:[%s2219_s1 + $0x8] sm:$0xff] }
   0x5   :  { %v1022_v13 = vld [vmem:[%s2220_s0 + $0x18] sm:$0xf0]  ;;  %v1400_v15 = vld [vmem:[%s2219_s1 + $0x10] sm:$0xff]  ;;  %v1370_v17 = vld [vmem:[%s2220_s0 + $0x124] sm:$0xf] }
   0x6   :  { %1302 = vmatmul.msk.bf16.vlgmr.msra.gmra.mxu1 %vm443_vm0, %v1017_v4  ;;  %541 = vmatpush.bf16.msra.mxu0 %v1404_v5  ;;  %v1025_v14 = vor.u32 %v1336_v12, %v1022_v13  ;;  %v1158_v18 = vld [vmem:[%s2220_s0 + $0x128] sm:$0xf0]  ;;  %v1398_v20 = vld [vmem:[%s2219_s1] sm:$0xff]  ;;  %v1335_v22 = vld [vmem:[%s2220_s0 + $0x4] sm:$0xf0] }
   0x7   :  { %1408 = vmatpush.bf16.msra.mxu2 %v1404_v5  ;;  %1319 = vmatmul.msk.bf16.vlgmr.msra.gmra.mxu3 %vm443_vm0, %v1153_v9  ;;  %v1161_v19 = vor.u32 %v1370_v17, %v1158_v18  ;;  %v1012_v21 = vld [vmem:[%s2220_s0] sm:$0xf]  ;;  %v1367_v24 = vld [vmem:[%s2220_s0 + $0x104] sm:$0xf0]  ;;  %v1338_v27 = vld [vmem:[%s2220_s0 + $0x24] sm:$0xf] }
   0x8   :  { %v1140_v23 = vld [vmem:[%s2220_s0 + $0x100] sm:$0xf]  ;;  %v1013_v25 = vor.u32 %v1335_v22, %v1012_v21  ;;  %v1030_v28 = vld [vmem:[%s2220_s0 + $0x28] sm:$0xf0]  ;;  %v1372_v30 = vld [vmem:[%s2220_s0 + $0x134] sm:$0xf] }
   0x9   :  { %v1141_v26 = vor.u32 %v1367_v24, %v1140_v23  ;;  %v1033_v29 = vor.u32 %v1338_v27, %v1030_v28  ;;  %v1166_v31 = vld [vmem:[%s2220_s0 + $0x138] sm:$0xf0]  ;;  %v1020_v33 = vld [vmem:[%s2220_s0 + $0x10] sm:$0xf]  ;;  %v1337_v34 = vld [vmem:[%s2220_s0 + $0x14] sm:$0xf0] }
   0xa   :  { %542 = vmatpush.bf16.msra.mxu0 %v1403_v6  ;;  %v1169_v32 = vor.u32 %v1372_v30, %v1166_v31  ;;  %v1148_v35 = vld [vmem:[%s2220_s0 + $0x110] sm:$0xf]  ;;  %v1369_v36 = vld [vmem:[%s2220_s0 + $0x114] sm:$0xf0]  ;;  %v1021_v37 = vor.u32 %v1337_v34, %v1020_v33  ;;  %v1340_v39 = vld [vmem:[%s2220_s0 + $0x34] sm:$0xf] }
   0xb   :  { %1409 = vmatpush.bf16.msra.mxu2 %v1403_v6  ;;  %v1149_v38 = vor.u32 %v1369_v36, %v1148_v35  ;;  %v1038_v40 = vld [vmem:[%s2220_s0 + $0x38] sm:$0xf0]  ;;  %v1374_v42 = vld [vmem:[%s2220_s0 + $0x144] sm:$0xf]  ;;  %v1174_v43 = vld [vmem:[%s2220_s0 + $0x148] sm:$0xf0] }
   0xc   :  { %v1041_v41 = vor.u32 %v1340_v39, %v1038_v40  ;;  %v1177_v44 = vor.u32 %v1374_v42, %v1174_v43  ;;  %v1028_v45 = vld [vmem:[%s2220_s0 + $0x20] sm:$0xf]  ;;  %v1339_v46 = vld [vmem:[%s2220_s0 + $0x24] sm:$0xf0]  ;;  %v1342_v51 = vld [vmem:[%s2220_s0 + $0x44] sm:$0xf] }
   0xd   :  { %v1156_v47 = vld [vmem:[%s2220_s0 + $0x120] sm:$0xf]  ;;  %v1371_v48 = vld [vmem:[%s2220_s0 + $0x124] sm:$0xf0]  ;;  %v1029_v49 = vor.u32 %v1339_v46, %v1028_v45  ;;  %v1046_v52 = vld [vmem:[%s2220_s0 + $0x48] sm:$0xf0] }
   0xe   :  { %543 = vmatpush.bf16.msra.mxu0 %v1402_v10  ;;  %v1157_v50 = vor.u32 %v1371_v48, %v1156_v47  ;;  %v1049_v53 = vor.u32 %v1342_v51, %v1046_v52  ;;  %v1376_v54 = vld [vmem:[%s2220_s0 + $0x154] sm:$0xf]  ;;  %v1182_v55 = vld [vmem:[%s2220_s0 + $0x158] sm:$0xf0]  ;;  %v1036_v57 = vld [vmem:[%s2220_s0 + $0x30] sm:$0xf] }
   0xf   :  { %1410 = vmatpush.bf16.msra.mxu2 %v1402_v10  ;;  %v1185_v56 = vor.u32 %v1376_v54, %v1182_v55  ;;  %v1341_v58 = vld [vmem:[%s2220_s0 + $0x34] sm:$0xf0]  ;;  %v1164_v59 = vld [vmem:[%s2220_s0 + $0x130] sm:$0xf]  ;;  %v1344_v63 = vld [vmem:[%s2220_s0 + $0x54] sm:$0xf] }
  0x10   :  { %v1373_v60 = vld [vmem:[%s2220_s0 + $0x134] sm:$0xf0]  ;;  %v1037_v61 = vor.u32 %v1341_v58, %v1036_v57  ;;  %v1054_v0 = vld [vmem:[%s2220_s0 + $0x58] sm:$0xf0]  ;;  %v1378_v2 = vld [vmem:[%s2220_s0 + $0x164] sm:$0xf] }
  0x11   :  { %v1165_v62 = vor.u32 %v1373_v60, %v1164_v59  ;;  %v1057_v1 = vor.u32 %v1344_v63, %v1054_v0  ;;  %v1190_v3 = vld [vmem:[%s2220_s0 + $0x168] sm:$0xf0]  ;;  %v1044_v5 = vld [vmem:[%s2220_s0 + $0x40] sm:$0xf]  ;;  %v1343_v6 = vld [vmem:[%s2220_s0 + $0x44] sm:$0xf0] }
  0x12   :  { %544 = vmatpush.bf16.msra.mxu0 %v1401_v11  ;;  %v1193_v4 = vor.u32 %v1378_v2, %v1190_v3  ;;  %v1172_v7 = vld [vmem:[%s2220_s0 + $0x140] sm:$0xf]  ;;  %v1375_v8 = vld [vmem:[%s2220_s0 + $0x144] sm:$0xf0]  ;;  %v1045_v9 = vor.u32 %v1343_v6, %v1044_v5  ;;  %v1062_v12 = vld [vmem:[%s2220_s0 + $0x68] sm:$0xf0] }
  0x13   :  { %1411 = vmatpush.bf16.msra.mxu2 %v1401_v11  ;;  %v1173_v10 = vor.u32 %v1375_v8, %v1172_v7  ;;  %v1346_v11 = vld [vmem:[%s2220_s0 + $0x64] sm:$0xf]  ;;  %v1345_v17 = vld [vmem:[%s2220_s0 + $0x54] sm:$0xf0]  ;;  %v1348_v23 = vld [vmem:[%s2220_s0 + $0x74] sm:$0xf] }
  0x14   :  { %v1065_v13 = vor.u32 %v1346_v11, %v1062_v12  ;;  %v1070_v24 = vld [vmem:[%s2220_s0 + $0x78] sm:$0xf0]  ;;  %v1206_v27 = vld [vmem:[%s2220_s0 + $0x188] sm:$0xf0]  ;;  %v1060_v28 = vld [vmem:[%s2220_s0 + $0x60] sm:$0xf] }
  0x15   :  { %v1188_v31 = vld [vmem:[%s2220_s0 + $0x160] sm:$0xf]  ;;  %v1350_v35 = vld [vmem:[%s2220_s0 + $0x84] sm:$0xf]  ;;  %v1078_v36 = vld [vmem:[%s2220_s0 + $0x88] sm:$0xf0] }
  0x16   :  { %1303 = vmatmul.msk.bf16.gmra.mxu1 %vm443_vm0, %v1025_v14  ;;  %545 = vmatpush.bf16.msra.mxu0 %v1400_v15  ;;  %v1380_v14 = vld [vmem:[%s2220_s0 + $0x174] sm:$0xf]  ;;  %v1214_v40 = vld [vmem:[%s2220_s0 + $0x198] sm:$0xf0]  ;;  %v1349_v42 = vld [vmem:[%s2220_s0 + $0x74] sm:$0xf0] }
  0x17   :  { %1412 = vmatpush.bf16.msra.mxu2 %v1400_v15  ;;  %1320 = vmatmul.msk.bf16.gmra.mxu3 %vm443_vm0, %v1161_v19  ;;  %v1198_v15 = vld [vmem:[%s2220_s0 + $0x178] sm:$0xf0]  ;;  %v1180_v19 = vld [vmem:[%s2220_s0 + $0x150] sm:$0xf]  ;;  %v1384_v39 = vld [vmem:[%s2220_s0 + $0x194] sm:$0xf] }
  0x18   :  { %v1201_v18 = vor.u32 %v1380_v14, %v1198_v15  ;;  %v1217_v43 = vor.u32 %v1384_v39, %v1214_v40  ;;  %v1196_v45 = vld [vmem:[%s2220_s0 + $0x170] sm:$0xf]  ;;  %v1381_v46 = vld [vmem:[%s2220_s0 + $0x174] sm:$0xf0]  ;;  %v1386_v55 = vld [vmem:[%s2220_s0 + $0x1a4] sm:$0xf] }
  0x19   :  { %v1197_v48 = vor.u32 %v1381_v46, %v1196_v45  ;;  %v1076_v57 = vld [vmem:[%s2220_s0 + $0x80] sm:$0xf]  ;;  %v1351_v58 = vld [vmem:[%s2220_s0 + $0x84] sm:$0xf0]  ;;  %v1094_v5 = vld [vmem:[%s2220_s0 + $0xa8] sm:$0xf0] }
  0x1a   :  { %546 = vmatpush.bf16.msra.mxu0 %v1399_v16  ;;  %v1383_v63 = vld [vmem:[%s2220_s0 + $0x184] sm:$0xf0]  ;;  %v1077_v0 = vor.u32 %v1351_v58, %v1076_v57  ;;  %v1238_v45 = vld [vmem:[%s2220_s0 + $0x1c8] sm:$0xf0] }
  0x1b   :  { %1413 = vmatpush.bf16.msra.mxu2 %v1399_v16  ;;  %v1052_v16 = vld [vmem:[%s2220_s0 + $0x50] sm:$0xf] }
  0x1c   :  { %v1053_v21 = vor.u32 %v1345_v17, %v1052_v16  ;;  %v1388_v16 = vld [vmem:[%s2220_s0 + $0x1b4] sm:$0xf]  ;;  %v1230_v17 = vld [vmem:[%s2220_s0 + $0x1b8] sm:$0xf0] }
  0x1e   :  { %547 = vmatpush.bf16.msra.mxu0 %v1398_v20 }
  0x1f   :  { %1414 = vmatpush.bf16.msra.mxu2 %v1398_v20  ;;  %v1377_v20 = vld [vmem:[%s2220_s0 + $0x154] sm:$0xf0] }
  0x20   :  { %v1181_v22 = vor.u32 %v1377_v20, %v1180_v19  ;;  %v1353_v19 = vld [vmem:[%s2220_s0 + $0x94] sm:$0xf0]  ;;  %v1233_v20 = vor.u32 %v1388_v16, %v1230_v17  ;;  %v1392_v16 = vld [vmem:[%s2220_s0 + $0x1d4] sm:$0xf]  ;;  %v1246_v17 = vld [vmem:[%s2220_s0 + $0x1d8] sm:$0xf0] }
  0x21   :  { %548 = vmatmul.bf16.vlgmr.msra.gmra.mxu0 %v1013_v25  ;;  %v1073_v25 = vor.u32 %v1348_v23, %v1070_v24  ;;  %v1212_v23 = vld [vmem:[%s2220_s0 + $0x190] sm:$0xf]  ;;  %v1385_v24 = vld [vmem:[%s2220_s0 + $0x194] sm:$0xf0] }
  0x22   :  { %628 = vmatmul.bf16.vlgmr.msra.gmra.mxu2 %v1141_v26  ;;  %v1382_v26 = vld [vmem:[%s2220_s0 + $0x184] sm:$0xf] }
  0x23   :  { %v1209_v30 = vor.u32 %v1382_v26, %v1206_v27 }
  0x26   :  { %1304 = vmatmul.msk.bf16.gmra.mxu1 %vm443_vm0, %v1033_v29  ;;  %v1347_v29 = vld [vmem:[%s2220_s0 + $0x64] sm:$0xf0] }
  0x27   :  { %1321 = vmatmul.msk.bf16.gmra.mxu3 %vm443_vm0, %v1169_v32  ;;  %v1379_v32 = vld [vmem:[%s2220_s0 + $0x164] sm:$0xf0]  ;;  %v1061_v33 = vor.u32 %v1347_v29, %v1060_v28  ;;  %v1213_v28 = vor.u32 %v1385_v24, %v1212_v23  ;;  %v1228_v23 = vld [vmem:[%s2220_s0 + $0x1b0] sm:$0xf]  ;;  %v1389_v24 = vld [vmem:[%s2220_s0 + $0x1b4] sm:$0xf0] }
  0x28   :  { %v1189_v34 = vor.u32 %v1379_v32, %v1188_v31  ;;  %v1102_v31 = vld [vmem:[%s2220_s0 + $0xb8] sm:$0xf0] }
  0x31   :  { %553 = vmatmul.bf16.gmra.mxu0 %v1021_v37  ;;  %v1081_v37 = vor.u32 %v1350_v35, %v1078_v36 }
  0x32   :  { %633 = vmatmul.bf16.gmra.mxu2 %v1149_v38 }
  0x36   :  { %1305 = vmatmul.msk.bf16.gmra.mxu1 %vm443_vm0, %v1041_v41  ;;  %v1068_v41 = vld [vmem:[%s2220_s0 + $0x70] sm:$0xf] }
  0x37   :  { %1322 = vmatmul.msk.bf16.gmra.mxu3 %vm443_vm0, %v1177_v44  ;;  %v1069_v47 = vor.u32 %v1349_v42, %v1068_v41 }
  0x41   :  { %558 = vmatmul.bf16.gmra.mxu0 %v1029_v49  ;;  %v1352_v49 = vld [vmem:[%s2220_s0 + $0x94] sm:$0xf] }
  0x42   :  { %638 = vmatmul.bf16.gmra.mxu2 %v1157_v50  ;;  %v1086_v50 = vld [vmem:[%s2220_s0 + $0x98] sm:$0xf0] }
  0x43   :  { %v1089_v52 = vor.u32 %v1352_v49, %v1086_v50 }
  0x46   :  { %1306 = vmatmul.msk.bf16.gmra.mxu1 %vm443_vm0, %v1049_v53 }
  0x47   :  { %1323 = vmatmul.msk.bf16.gmra.mxu3 %vm443_vm0, %v1185_v56  ;;  %v1222_v56 = vld [vmem:[%s2220_s0 + $0x1a8] sm:$0xf0] }
  0x48   :  { %v1225_v59 = vor.u32 %v1386_v55, %v1222_v56 }
  0x51   :  { %563 = vmatmul.bf16.gmra.mxu0 %v1037_v61  ;;  %v1712_v61 = vld [vmem:[%s2221_s2] ss:$0 sm:$0xff] }
  0x52   :  { %643 = vmatmul.bf16.gmra.mxu2 %v1165_v62  ;;  %v1204_v62 = vld [vmem:[%s2220_s0 + $0x180] sm:$0xf] }
  0x53   :  { %v1205_v2 = vor.u32 %v1383_v63, %v1204_v62  ;;  %v1358_v62 = vld [vmem:[%s2220_s0 + $0xc4] sm:$0xf]  ;;  %v1110_v63 = vld [vmem:[%s2220_s0 + $0xc8] sm:$0xf0] }
  0x56   :  { %1307 = vmatmul.msk.bf16.gmra.mxu1 %vm443_vm0, %v1057_v1 }
  0x57   :  { %1324 = vmatmul.msk.bf16.gmra.mxu3 %vm443_vm0, %v1193_v4  ;;  %v1354_v4 = vld [vmem:[%s2220_s0 + $0xa4] sm:$0xf] }
  0x58   :  { %v1097_v8 = vor.u32 %v1354_v4, %v1094_v5  ;;  %v1113_v4 = vor.u32 %v1358_v62, %v1110_v63 }
  0x61   :  { %568 = vmatmul.bf16.gmra.mxu0 %v1045_v9 }
  0x62   :  { %648 = vmatmul.bf16.gmra.mxu2 %v1173_v10 }
  0x66   :  { %1308 = vmatmul.msk.bf16.gmra.mxu1 %vm443_vm0, %v1065_v13 }
  0x67   :  { %1325 = vmatmul.msk.bf16.gmra.mxu3 %vm443_vm0, %v1201_v18  ;;  %v1084_v18 = vld [vmem:[%s2220_s0 + $0x90] sm:$0xf] }
  0x68   :  { %v1085_v26 = vor.u32 %v1353_v19, %v1084_v18  ;;  %v1100_v19 = vld [vmem:[%s2220_s0 + $0xb0] sm:$0xf] }
  0x71   :  { %573 = vmatmul.bf16.gmra.mxu0 %v1053_v21 }
  0x72   :  { %653 = vmatmul.bf16.gmra.mxu2 %v1181_v22 }
  0x76   :  { %1309 = vmatmul.msk.bf16.gmra.mxu1 %vm443_vm0, %v1073_v25 }
  0x77   :  { %1326 = vmatmul.msk.bf16.gmra.mxu3 %vm443_vm0, %v1209_v30  ;;  %v1356_v30 = vld [vmem:[%s2220_s0 + $0xb4] sm:$0xf] }
  0x81   :  { %578 = vmatmul.bf16.gmra.mxu0 %v1061_v33 }
  0x82   :  { %658 = vmatmul.bf16.gmra.mxu2 %v1189_v34  ;;  %v1105_v34 = vor.u32 %v1356_v30, %v1102_v31  ;;  %v1229_v30 = vor.u32 %v1389_v24, %v1228_v23  ;;  %v1116_v23 = vld [vmem:[%s2220_s0 + $0xd0] sm:$0xf]  ;;  %v1361_v24 = vld [vmem:[%s2220_s0 + $0xd4] sm:$0xf0] }
  0x83   :  { %v718_v38 = vpop.f32.mrf.mxu1 }
  0x86   :  { %1310 = vmatmul.msk.bf16.gmra.mxu1 %vm443_vm0, %v1081_v37 }
  0x87   :  { %1327 = vmatmul.msk.bf16.gmra.mxu3 %vm443_vm0, %v1217_v43 }
  0x8a   :  { %v1692_v51 = vpop.f32.mrf.mxu3 }
  0x8b   :  { %v720_v44 = vpop.f32.mrf.mxu1 }
  0x91   :  { %583 = vmatmul.bf16.gmra.mxu0 %v1069_v47  ;;  %v1092_v47 = vld [vmem:[%s2220_s0 + $0xa0] sm:$0xf] }
  0x92   :  { %663 = vmatmul.bf16.gmra.mxu2 %v1197_v48  ;;  %v1695_v54 = vpop.f32.mrf.mxu3  ;;  %v1355_v48 = vld [vmem:[%s2220_s0 + $0xa4] sm:$0xf0] }
  0x93   :  { %v723_v53 = vpop.f32.mrf.mxu1  ;;  %v1093_v56 = vor.u32 %v1355_v48, %v1092_v47 }
  0x96   :  { %1311 = vmatmul.msk.bf16.gmra.mxu1 %vm443_vm0, %v1089_v52  ;;  %v1220_v52 = vld [vmem:[%s2220_s0 + $0x1a0] sm:$0xf] }
  0x97   :  { %1328 = vmatmul.msk.bf16.gmra.mxu3 %vm443_vm0, %v1225_v59 }
  0x9a   :  { %v1728_v6 = vpop.f32.mrf.mxu3 }
  0x9b   :  { %v725_v60 = vpop.f32.mrf.mxu1 }
  0x9e   :  { %v549_v1 = vpop.f32.mrf.mxu0 }
  0x9f   :  { %v550_v3 = vadd.f32 %v1712_v61, %v549_v1 }
  0xa1   :  { %v719_v7 = vadd.f32 %v718_v38, %v550_v3  ;;  %588 = vmatmul.bf16.gmra.mxu0 %v1077_v0 }
  0xa2   :  { %668 = vmatmul.bf16.gmra.mxu2 %v1205_v2  ;;  %v1739_v14 = vpop.f32.mrf.mxu3 }
  0xa3   :  { %v878_v9 = vmax.f32 %v719_v7, 0.0  ;;  %v1730_v10 = vpop.f32.mrf.mxu1 }
  0xa5   :  { %942 = vst [vmem:[%s2222_s3] sm:$0xff] %v878_v9  ;;  %v1735_v11 = vpop.f32.mrf.mxu2 }
  0xa6   :  { %1312 = vmatmul.msk.bf16.gmra.mxu1 %vm443_vm0, %v1097_v8  ;;  %v551_v12 = vpop.f32.mrf.mxu0 }
  0xa7   :  { %v552_v13 = vadd.f32 %v1712_v61, %v551_v12  ;;  %1329 = vmatmul.msk.bf16.gmra.mxu3 %vm443_vm0, %v1233_v20  ;;  %v1357_v20 = vld [vmem:[%s2220_s0 + $0xb4] sm:$0xf0] }
  0xa9   :  { %v721_v15 = vadd.f32 %v720_v44, %v552_v13  ;;  %v1390_v44 = vld [vmem:[%s2220_s0 + $0x1c4] sm:$0xf] }
  0xaa   :  { %v1774_v32 = vpop.f32.mrf.mxu3  ;;  %v1241_v49 = vor.u32 %v1390_v44, %v1238_v45 }
  0xab   :  { %v879_v21 = vmax.f32 %v721_v15, 0.0  ;;  %v1753_v22 = vpop.f32.mrf.mxu1 }
  0xad   :  { %943 = vst [vmem:[%s2222_s3 + $0x8] sm:$0xff] %v879_v21  ;;  %v1765_v25 = vpop.f32.mrf.mxu2 }
  0xae   :  { %v554_v27 = vpop.f32.mrf.mxu0 }
  0xaf   :  { %v555_v29 = vadd.f32 %v1712_v61, %v554_v27  ;;  %v1101_v27 = vor.u32 %v1357_v20, %v1100_v19  ;;  %v1396_v20 = vld [vmem:[%s2220_s0 + $0x1f4] sm:$0xf] }
  0xb1   :  { %v724_v33 = vadd.f32 %v723_v53, %v555_v29  ;;  %593 = vmatmul.bf16.gmra.mxu0 %v1085_v26  ;;  %v1387_v53 = vld [vmem:[%s2220_s0 + $0x1a4] sm:$0xf0] }
  0xb2   :  { %673 = vmatmul.bf16.gmra.mxu2 %v1213_v28  ;;  %v1784_v41 = vpop.f32.mrf.mxu3  ;;  %v1221_v59 = vor.u32 %v1387_v53, %v1220_v52  ;;  %v1108_v53 = vld [vmem:[%s2220_s0 + $0xc0] sm:$0xf] }
  0xb3   :  { %v880_v35 = vmax.f32 %v724_v33, 0.0  ;;  %v1776_v36 = vpop.f32.mrf.mxu1  ;;  %v1360_v33 = vld [vmem:[%s2220_s0 + $0xd4] sm:$0xf] }
  0xb5   :  { %944 = vst [vmem:[%s2222_s3 + $0x10] sm:$0xff] %v880_v35  ;;  %v634_v37 = vpop.f32.mrf.mxu2 }
  0xb6   :  { %v635_v38 = vadd.f32 %v1712_v61, %v634_v37  ;;  %1313 = vmatmul.msk.bf16.gmra.mxu1 %vm443_vm0, %v1105_v34  ;;  %v556_v39 = vpop.f32.mrf.mxu0  ;;  %v1118_v34 = vld [vmem:[%s2220_s0 + $0xd8] sm:$0xf0] }
  0xb7   :  { %v557_v40 = vadd.f32 %v1712_v61, %v556_v39  ;;  %1330 = vmatmul.msk.bf16.gmra.mxu3 %vm443_vm0, %v1241_v49  ;;  %v1394_v49 = vld [vmem:[%s2220_s0 + $0x1e4] sm:$0xf] }
  0xb8   :  { %v804_v42 = vadd.f32 %v1692_v51, %v635_v38 }
  0xb9   :  { %v726_v43 = vadd.f32 %v725_v60, %v557_v40  ;;  %v1121_v40 = vor.u32 %v1360_v33, %v1118_v34 }
  0xba   :  { %v912_v46 = vmax.f32 %v804_v42, 0.0  ;;  %v1822_v0 = vpop.f32.mrf.mxu3 }
  0xbb   :  { %v881_v50 = vmax.f32 %v726_v43, 0.0  ;;  %v1799_v51 = vpop.f32.mrf.mxu1 }
  0xbc   :  { %976 = vst [vmem:[%s2222_s3 + $0x110] sm:$0xff] %v912_v46 }
  0xbd   :  { %945 = vst [vmem:[%s2222_s3 + $0x18] sm:$0xff] %v881_v50  ;;  %v636_v55 = vpop.f32.mrf.mxu2  ;;  %v1254_v50 = vld [vmem:[%s2220_s0 + $0x1e8] sm:$0xf0] }
  0xbe   :  { %v637_v57 = vadd.f32 %v1712_v61, %v636_v55  ;;  %v559_v58 = vpop.f32.mrf.mxu0  ;;  %v1359_v55 = vld [vmem:[%s2220_s0 + $0xc4] sm:$0xf0] }
  0xbf   :  { %v560_v60 = vadd.f32 %v1712_v61, %v559_v58  ;;  %v1391_v58 = vld [vmem:[%s2220_s0 + $0x1c4] sm:$0xf0] }
  0xc0   :  { %v806_v1 = vadd.f32 %v1695_v54, %v637_v57  ;;  %v1236_v57 = vld [vmem:[%s2220_s0 + $0x1c0] sm:$0xf] }
  0xc1   :  { %v729_v2 = vadd.f32 %v1730_v10, %v560_v60  ;;  %598 = vmatmul.bf16.gmra.mxu0 %v1093_v56  ;;  %v1109_v60 = vor.u32 %v1359_v55, %v1108_v53 }
  0xc2   :  { %v913_v3 = vmax.f32 %v806_v1, 0.0  ;;  %678 = vmatmul.bf16.gmra.mxu2 %v1221_v59  ;;  %v1837_v12 = vpop.f32.mrf.mxu3  ;;  %v1237_v1 = vor.u32 %v1391_v58, %v1236_v57 }
  0xc3   :  { %v882_v5 = vmax.f32 %v729_v2, 0.0  ;;  %v1826_v7 = vpop.f32.mrf.mxu1 }
  0xc4   :  { %977 = vst [vmem:[%s2222_s3 + $0x118] sm:$0xff] %v913_v3  ;;  %v1362_v3 = vld [vmem:[%s2220_s0 + $0xe4] sm:$0xf] }
  0xc5   :  { %946 = vst [vmem:[%s2222_s3 + $0x20] sm:$0xff] %v882_v5  ;;  %v639_v8 = vpop.f32.mrf.mxu2 }
  0xc6   :  { %v640_v54 = vadd.f32 %v1712_v61, %v639_v8  ;;  %1314 = vmatmul.msk.bf16.gmra.mxu1 %vm443_vm0, %v1113_v4  ;;  %v561_v9 = vpop.f32.mrf.mxu0  ;;  %v1126_v4 = vld [vmem:[%s2220_s0 + $0xe8] sm:$0xf0] }
  0xc7   :  { %v562_v10 = vadd.f32 %v1712_v61, %v561_v9 }
  0xc8   :  { %v809_v13 = vadd.f32 %v1728_v6, %v640_v54  ;;  %v1249_v6 = vor.u32 %v1392_v16, %v1246_v17 }
  0xc9   :  { %v731_v15 = vadd.f32 %v1753_v22, %v562_v10  ;;  %v1129_v10 = vor.u32 %v1362_v3, %v1126_v4  ;;  %v1366_v3 = vld [vmem:[%s2220_s0 + $0x104] sm:$0xf]  ;;  %v1142_v4 = vld [vmem:[%s2220_s0 + $0x108] sm:$0xf0] }
  0xca   :  { %v914_v18 = vmax.f32 %v809_v13, 0.0  ;;  %1331 = vmatmul.msk.bf16.gmra.mxu3 %vm443_vm0, %v1249_v6  ;;  %v1876_v35 = vpop.f32.mrf.mxu3  ;;  %v1262_v6 = vld [vmem:[%s2220_s0 + $0x1f8] sm:$0xf0] }
  0xcb   :  { %v883_v21 = vmax.f32 %v731_v15, 0.0  ;;  %v1853_v22 = vpop.f32.mrf.mxu1 }
  0xcc   :  { %978 = vst [vmem:[%s2222_s3 + $0x120] sm:$0xff] %v914_v18 }
  0xcd   :  { %947 = vst [vmem:[%s2222_s3 + $0x28] sm:$0xff] %v883_v21  ;;  %v641_v26 = vpop.f32.mrf.mxu2 }
  0xce   :  { %v642_v28 = vadd.f32 %v1712_v61, %v641_v26  ;;  %v564_v29 = vpop.f32.mrf.mxu0 }
  0xcf   :  { %v565_v31 = vadd.f32 %v1712_v61, %v564_v29 }
  0xd0   :  { %v811_v37 = vadd.f32 %v1739_v14, %v642_v28  ;;  %v1393_v28 = vld [vmem:[%s2220_s0 + $0x1d4] sm:$0xf0] }
  0xd1   :  { %v734_v38 = vadd.f32 %v1776_v36, %v565_v31  ;;  %603 = vmatmul.bf16.gmra.mxu0 %v1101_v27  ;;  %v1244_v27 = vld [vmem:[%s2220_s0 + $0x1d0] sm:$0xf]  ;;  %v1117_v31 = vor.u32 %v1361_v24, %v1116_v23  ;;  %v1365_v23 = vld [vmem:[%s2220_s0 + $0xf4] sm:$0xf0] }
  0xd2   :  { %v915_v39 = vmax.f32 %v811_v37, 0.0  ;;  %683 = vmatmul.bf16.gmra.mxu2 %v1229_v30  ;;  %v1891_v46 = vpop.f32.mrf.mxu3  ;;  %v1245_v37 = vor.u32 %v1393_v28, %v1244_v27 }
  0xd3   :  { %v884_v42 = vmax.f32 %v734_v38, 0.0  ;;  %v1880_v43 = vpop.f32.mrf.mxu1 }
  0xd4   :  { %979 = vst [vmem:[%s2222_s3 + $0x128] sm:$0xff] %v915_v39  ;;  %v1364_v39 = vld [vmem:[%s2220_s0 + $0xf4] sm:$0xf] }
  0xd5   :  { %948 = vst [vmem:[%s2222_s3 + $0x30] sm:$0xff] %v884_v42  ;;  %v644_v44 = vpop.f32.mrf.mxu2 }
  0xd6   :  { %v645_v14 = vadd.f32 %v1712_v61, %v644_v44  ;;  %1315 = vmatmul.msk.bf16.gmra.mxu1 %vm443_vm0, %v1121_v40  ;;  %v566_v36 = vpop.f32.mrf.mxu0  ;;  %v1134_v40 = vld [vmem:[%s2220_s0 + $0xf8] sm:$0xf0] }
  0xd7   :  { %v567_v45 = vadd.f32 %v1712_v61, %v566_v36  ;;  %v1137_v36 = vor.u32 %v1364_v39, %v1134_v40 }
  0xd8   :  { %v814_v47 = vadd.f32 %v1774_v32, %v645_v14  ;;  %v1257_v32 = vor.u32 %v1394_v49, %v1254_v50 }
  0xd9   :  { %v736_v48 = vadd.f32 %v1799_v51, %v567_v45 }
  0xda   :  { %v916_v52 = vmax.f32 %v814_v47, 0.0  ;;  %1332 = vmatmul.msk.bf16.gmra.mxu3 %vm443_vm0, %v1257_v32  ;;  %v1932_v54 = vpop.f32.mrf.mxu3  ;;  %v1124_v32 = vld [vmem:[%s2220_s0 + $0xe0] sm:$0xf] }
  0xdb   :  { %v885_v56 = vmax.f32 %v736_v48, 0.0  ;;  %v1907_v51 = vpop.f32.mrf.mxu1 }
  0xdc   :  { %980 = vst [vmem:[%s2222_s3 + $0x130] sm:$0xff] %v916_v52 }
  0xdd   :  { %949 = vst [vmem:[%s2222_s3 + $0x38] sm:$0xff] %v885_v56  ;;  %v646_v59 = vpop.f32.mrf.mxu2  ;;  %v1363_v56 = vld [vmem:[%s2220_s0 + $0xe4] sm:$0xf0] }
  0xde   :  { %v647_v62 = vadd.f32 %v1712_v61, %v646_v59  ;;  %v569_v63 = vpop.f32.mrf.mxu0  ;;  %v1252_v59 = vld [vmem:[%s2220_s0 + $0x1e0] sm:$0xf] }
  0xdf   :  { %v570_v2 = vadd.f32 %v1712_v61, %v569_v63 }
  0xe0   :  { %v816_v5 = vadd.f32 %v1784_v41, %v647_v62 }
  0xe1   :  { %v739_v8 = vadd.f32 %v1826_v7, %v570_v2  ;;  %608 = vmatmul.bf16.gmra.mxu0 %v1109_v60  ;;  %v1125_v60 = vor.u32 %v1363_v56, %v1124_v32 }
  0xe2   :  { %v917_v9 = vmax.f32 %v816_v5, 0.0  ;;  %688 = vmatmul.bf16.gmra.mxu2 %v1237_v1  ;;  %v1967_v29 = vpop.f32.mrf.mxu3 }
  0xe3   :  { %v886_v13 = vmax.f32 %v739_v8, 0.0  ;;  %v1934_v15 = vpop.f32.mrf.mxu1 }
  0xe4   :  { %981 = vst [vmem:[%s2222_s3 + $0x138] sm:$0xff] %v917_v9 }
  0xe5   :  { %950 = vst [vmem:[%s2222_s3 + $0x40] sm:$0xff] %v886_v13  ;;  %v649_v41 = vpop.f32.mrf.mxu2  ;;  %v1145_v13 = vor.u32 %v1366_v3, %v1142_v4 }
  0xe6   :  { %v650_v7 = vadd.f32 %v1712_v61, %v649_v41  ;;  %1316 = vmatmul.msk.bf16.gmra.mxu1 %vm443_vm0, %v1129_v10  ;;  %v571_v16 = vpop.f32.mrf.mxu0 }
  0xe7   :  { %v572_v17 = vadd.f32 %v1712_v61, %v571_v16 }
  0xe8   :  { %v819_v18 = vadd.f32 %v1822_v0, %v650_v7  ;;  %v1265_v0 = vor.u32 %v1396_v20, %v1262_v6 }
  0xe9   :  { %v741_v19 = vadd.f32 %v1853_v22, %v572_v17 }
  0xea   :  { %v918_v21 = vmax.f32 %v819_v18, 0.0  ;;  %1333 = vmatmul.msk.bf16.gmra.mxu3 %vm443_vm0, %v1265_v0  ;;  %v1994_v49 = vpop.f32.mrf.mxu3 }
  0xeb   :  { %v887_v26 = vmax.f32 %v741_v19, 0.0  ;;  %v1959_v22 = vpop.f32.mrf.mxu1 }
  0xec   :  { %982 = vst [vmem:[%s2222_s3 + $0x140] sm:$0xff] %v918_v21  ;;  %v1132_v21 = vld [vmem:[%s2220_s0 + $0xf0] sm:$0xf] }
  0xed   :  { %951 = vst [vmem:[%s2222_s3 + $0x48] sm:$0xff] %v887_v26  ;;  %v651_v30 = vpop.f32.mrf.mxu2  ;;  %v1260_v26 = vld [vmem:[%s2220_s0 + $0x1f0] sm:$0xf]  ;;  %v1133_v27 = vor.u32 %v1365_v23, %v1132_v21 }
  0xee   :  { %v652_v33 = vadd.f32 %v1712_v61, %v651_v30  ;;  %v574_v34 = vpop.f32.mrf.mxu0 }
  0xef   :  { %v575_v38 = vadd.f32 %v1712_v61, %v574_v34 }
  0xf0   :  { %v821_v42 = vadd.f32 %v1837_v12, %v652_v33 }
  0xf1   :  { %v744_v44 = vadd.f32 %v1880_v43, %v575_v38  ;;  %613 = vmatmul.bf16.gmra.mxu0 %v1117_v31 }
  0xf2   :  { %v919_v14 = vmax.f32 %v821_v42, 0.0  ;;  %693 = vmatmul.bf16.gmra.mxu2 %v1245_v37  ;;  %v835_v5 = vpop.f32.mrf.mxu3 }
  0xf3   :  { %v888_v45 = vmax.f32 %v744_v44, 0.0  ;;  %v1986_v47 = vpop.f32.mrf.mxu1 }
  0xf4   :  { %983 = vst [vmem:[%s2222_s3 + $0x148] sm:$0xff] %v919_v14 }
  0xf5   :  { %952 = vst [vmem:[%s2222_s3 + $0x50] sm:$0xff] %v888_v45  ;;  %v654_v48 = vpop.f32.mrf.mxu2 }
  0xf6   :  { %v655_v12 = vadd.f32 %v1712_v61, %v654_v48  ;;  %1317 = vmatmul.msk.bf16.gmra.mxu1 %vm443_vm0, %v1137_v36  ;;  %v576_v43 = vpop.f32.mrf.mxu0 }
  0xf7   :  { %v577_v50 = vadd.f32 %v1712_v61, %v576_v43 }
  0xf8   :  { %v824_v52 = vadd.f32 %v1876_v35, %v655_v12  ;;  %v1395_v35 = vld [vmem:[%s2220_s0 + $0x1e4] sm:$0xf0] }
  0xf9   :  { %v746_v53 = vadd.f32 %v1907_v51, %v577_v50  ;;  %v1253_v1 = vor.u32 %v1395_v35, %v1252_v59 }
  0xfa   :  { %v920_v55 = vmax.f32 %v824_v52, 0.0  ;;  %v838_v20 = vpop.f32.mrf.mxu3 }
  0xfb   :  { %v889_v57 = vmax.f32 %v746_v53, 0.0  ;;  %v755_v58 = vpop.f32.mrf.mxu1 }
  0xfc   :  { %984 = vst [vmem:[%s2222_s3 + $0x150] sm:$0xff] %v920_v55 }
  0xfd   :  { %953 = vst [vmem:[%s2222_s3 + $0x58] sm:$0xff] %v889_v57  ;;  %v656_v51 = vpop.f32.mrf.mxu2 }
  0xfe   :  { %v657_v62 = vadd.f32 %v1712_v61, %v656_v51  ;;  %v579_v63 = vpop.f32.mrf.mxu0 }
  0xff   :  { %v580_v2 = vadd.f32 %v1712_v61, %v579_v63 }
 0x100   :  { %v826_v8 = vadd.f32 %v1891_v46, %v657_v62 }
 0x101   :  { %v749_v9 = vadd.f32 %v1934_v15, %v580_v2  ;;  %618 = vmatmul.bf16.gmra.mxu0 %v1125_v60 }
 0x102   :  { %v921_v10 = vmax.f32 %v826_v8, 0.0  ;;  %698 = vmatmul.bf16.gmra.mxu2 %v1253_v1  ;;  %v840_v42 = vpop.f32.mrf.mxu3 }
 0x103   :  { %v890_v41 = vmax.f32 %v749_v9, 0.0  ;;  %v758_v7 = vpop.f32.mrf.mxu1 }
 0x104   :  { %985 = vst [vmem:[%s2222_s3 + $0x158] sm:$0xff] %v921_v10 }
 0x105   :  { %954 = vst [vmem:[%s2222_s3 + $0x60] sm:$0xff] %v890_v41  ;;  %v659_v16 = vpop.f32.mrf.mxu2 }
 0x106   :  { %v660_v17 = vadd.f32 %v1712_v61, %v659_v16  ;;  %1318 = vmatmul.msk.bf16.gmra.mxu1 %vm443_vm0, %v1145_v13  ;;  %v581_v46 = vpop.f32.mrf.mxu0 }
 0x107   :  { %v582_v15 = vadd.f32 %v1712_v61, %v581_v46 }
 0x108   :  { %v829_v18 = vadd.f32 %v1932_v54, %v660_v17  ;;  %v1397_v54 = vld [vmem:[%s2220_s0 + $0x1f4] sm:$0xf0] }
 0x109   :  { %v751_v19 = vadd.f32 %v1959_v22, %v582_v15  ;;  %v1261_v31 = vor.u32 %v1397_v54, %v1260_v26 }
 0x10a   :  { %v922_v6 = vmax.f32 %v829_v18, 0.0  ;;  %v843_v52 = vpop.f32.mrf.mxu3 }
 0x10b   :  { %v891_v24 = vmax.f32 %v751_v19, 0.0  ;;  %v760_v0 = vpop.f32.mrf.mxu1 }
 0x10c   :  { %986 = vst [vmem:[%s2222_s3 + $0x160] sm:$0xff] %v922_v6 }
 0x10d   :  { %955 = vst [vmem:[%s2222_s3 + $0x68] sm:$0xff] %v891_v24  ;;  %v661_v22 = vpop.f32.mrf.mxu2 }
 0x10e   :  { %v662_v28 = vadd.f32 %v1712_v61, %v661_v22  ;;  %v584_v30 = vpop.f32.mrf.mxu0 }
 0x10f   :  { %v585_v33 = vadd.f32 %v1712_v61, %v584_v30 }
 0x110   :  { %v831_v34 = vadd.f32 %v1967_v29, %v662_v28 }
 0x111   :  { %v754_v37 = vadd.f32 %v1986_v47, %v585_v33  ;;  %623 = vmatmul.bf16.gmra.mxu0 %v1133_v27 }
 0x112   :  { %v923_v38 = vmax.f32 %v831_v34, 0.0  ;;  %703 = vmatmul.bf16.gmra.mxu2 %v1261_v31  ;;  %v845_v63 = vpop.f32.mrf.mxu3 }
 0x113   :  { %v892_v39 = vmax.f32 %v754_v37, 0.0  ;;  %v763_v40 = vpop.f32.mrf.mxu1 }
 0x114   :  { %987 = vst [vmem:[%s2222_s3 + $0x168] sm:$0xff] %v923_v38 }
 0x115   :  { %956 = vst [vmem:[%s2222_s3 + $0x70] sm:$0xff] %v892_v39  ;;  %v664_v44 = vpop.f32.mrf.mxu2 }
 0x116   :  { %v665_v14 = vadd.f32 %v1712_v61, %v664_v44  ;;  %v586_v29 = vpop.f32.mrf.mxu0 }
 0x117   :  { %v587_v36 = vadd.f32 %v1712_v61, %v586_v29 }
 0x118   :  { %v834_v45 = vadd.f32 %v1994_v49, %v665_v14 }
 0x119   :  { %v756_v47 = vadd.f32 %v755_v58, %v587_v36 }
 0x11a   :  { %v924_v48 = vmax.f32 %v834_v45, 0.0  ;;  %v848_v16 = vpop.f32.mrf.mxu3 }
 0x11b   :  { %v893_v12 = vmax.f32 %v756_v47, 0.0  ;;  %v765_v43 = vpop.f32.mrf.mxu1 }
 0x11c   :  { %988 = vst [vmem:[%s2222_s3 + $0x170] sm:$0xff] %v924_v48 }
 0x11d   :  { %957 = vst [vmem:[%s2222_s3 + $0x78] sm:$0xff] %v893_v12  ;;  %v666_v50 = vpop.f32.mrf.mxu2 }
 0x11e   :  { %v667_v53 = vadd.f32 %v1712_v61, %v666_v50  ;;  %v589_v55 = vpop.f32.mrf.mxu0 }
 0x11f   :  { %v590_v32 = vadd.f32 %v1712_v61, %v589_v55 }
 0x120   :  { %v836_v49 = vadd.f32 %v835_v5, %v667_v53 }
 0x121   :  { %v759_v56 = vadd.f32 %v758_v7, %v590_v32 }
 0x122   :  { %v925_v57 = vmax.f32 %v836_v49, 0.0  ;;  %v850_v54 = vpop.f32.mrf.mxu3 }
 0x123   :  { %v894_v58 = vmax.f32 %v759_v56, 0.0  ;;  %v768_v59 = vpop.f32.mrf.mxu1 }
 0x124   :  { %989 = vst [vmem:[%s2222_s3 + $0x178] sm:$0xff] %v925_v57 }
 0x125   :  { %958 = vst [vmem:[%s2222_s3 + $0x80] sm:$0xff] %v894_v58  ;;  %v669_v35 = vpop.f32.mrf.mxu2 }
 0x126   :  { %v670_v51 = vadd.f32 %v1712_v61, %v669_v35  ;;  %v591_v60 = vpop.f32.mrf.mxu0 }
 0x127   :  { %v592_v62 = vadd.f32 %v1712_v61, %v591_v60 }
 0x128   :  { %v839_v1 = vadd.f32 %v838_v20, %v670_v51 }
 0x129   :  { %v761_v2 = vadd.f32 %v760_v0, %v592_v62 }
 0x12a   :  { %v926_v3 = vmax.f32 %v839_v1, 0.0 }
 0x12b   :  { %v895_v4 = vmax.f32 %v761_v2, 0.0  ;;  %v770_v5 = vpop.f32.mrf.mxu1 }
 0x12c   :  { %990 = vst [vmem:[%s2222_s3 + $0x180] sm:$0xff] %v926_v3 }
 0x12d   :  { %959 = vst [vmem:[%s2222_s3 + $0x88] sm:$0xff] %v895_v4  ;;  %v671_v8 = vpop.f32.mrf.mxu2 }
 0x12e   :  { %v672_v9 = vadd.f32 %v1712_v61, %v671_v8  ;;  %v594_v10 = vpop.f32.mrf.mxu0 }
 0x12f   :  { %v595_v13 = vadd.f32 %v1712_v61, %v594_v10 }
 0x130   :  { %v841_v41 = vadd.f32 %v840_v42, %v672_v9 }
 0x131   :  { %v764_v7 = vadd.f32 %v763_v40, %v595_v13  ;;  %v853_v40 = vpop.f32.mrf.mxu3 }
 0x132   :  { %v927_v17 = vmax.f32 %v841_v41, 0.0 }
 0x133   :  { %v896_v46 = vmax.f32 %v764_v7, 0.0  ;;  %v773_v15 = vpop.f32.mrf.mxu1 }
 0x134   :  { %991 = vst [vmem:[%s2222_s3 + $0x188] sm:$0xff] %v927_v17 }
 0x135   :  { %960 = vst [vmem:[%s2222_s3 + $0x90] sm:$0xff] %v896_v46  ;;  %v674_v18 = vpop.f32.mrf.mxu2 }
 0x136   :  { %v675_v19 = vadd.f32 %v1712_v61, %v674_v18  ;;  %v596_v20 = vpop.f32.mrf.mxu0 }
 0x137   :  { %v597_v6 = vadd.f32 %v1712_v61, %v596_v20 }
 0x138   :  { %v844_v21 = vadd.f32 %v843_v52, %v675_v19 }
 0x139   :  { %v766_v23 = vadd.f32 %v765_v43, %v597_v6  ;;  %v855_v53 = vpop.f32.mrf.mxu3 }
 0x13a   :  { %v928_v24 = vmax.f32 %v844_v21, 0.0 }
 0x13b   :  { %v897_v0 = vmax.f32 %v766_v23, 0.0  ;;  %v775_v26 = vpop.f32.mrf.mxu1 }
 0x13c   :  { %992 = vst [vmem:[%s2222_s3 + $0x190] sm:$0xff] %v928_v24 }
 0x13d   :  { %961 = vst [vmem:[%s2222_s3 + $0x98] sm:$0xff] %v897_v0  ;;  %v676_v22 = vpop.f32.mrf.mxu2 }
 0x13e   :  { %v677_v27 = vadd.f32 %v1712_v61, %v676_v22  ;;  %v599_v28 = vpop.f32.mrf.mxu0 }
 0x13f   :  { %v600_v30 = vadd.f32 %v1712_v61, %v599_v28 }
 0x140   :  { %v846_v31 = vadd.f32 %v845_v63, %v677_v27 }
 0x141   :  { %v769_v33 = vadd.f32 %v768_v59, %v600_v30  ;;  %v858_v63 = vpop.f32.mrf.mxu3 }
 0x142   :  { %v929_v34 = vmax.f32 %v846_v31, 0.0 }
 0x143   :  { %v898_v37 = vmax.f32 %v769_v33, 0.0  ;;  %v778_v38 = vpop.f32.mrf.mxu1 }
 0x144   :  { %993 = vst [vmem:[%s2222_s3 + $0x198] sm:$0xff] %v929_v34 }
 0x145   :  { %962 = vst [vmem:[%s2222_s3 + $0xa0] sm:$0xff] %v898_v37  ;;  %v679_v39 = vpop.f32.mrf.mxu2 }
 0x146   :  { %v680_v42 = vadd.f32 %v1712_v61, %v679_v39  ;;  %v601_v44 = vpop.f32.mrf.mxu0 }
 0x147   :  { %v602_v14 = vadd.f32 %v1712_v61, %v601_v44 }
 0x148   :  { %v849_v29 = vadd.f32 %v848_v16, %v680_v42 }
 0x149   :  { %v771_v36 = vadd.f32 %v770_v5, %v602_v14  ;;  %v860_v17 = vpop.f32.mrf.mxu3 }
 0x14a   :  { %v930_v45 = vmax.f32 %v849_v29, 0.0 }
 0x14b   :  { %v899_v47 = vmax.f32 %v771_v36, 0.0  ;;  %v780_v48 = vpop.f32.mrf.mxu1 }
 0x14c   :  { %994 = vst [vmem:[%s2222_s3 + $0x1a0] sm:$0xff] %v930_v45 }
 0x14d   :  { %963 = vst [vmem:[%s2222_s3 + $0xa8] sm:$0xff] %v899_v47  ;;  %v681_v12 = vpop.f32.mrf.mxu2 }
 0x14e   :  { %v682_v43 = vadd.f32 %v1712_v61, %v681_v12  ;;  %v604_v50 = vpop.f32.mrf.mxu0 }
 0x14f   :  { %v605_v52 = vadd.f32 %v1712_v61, %v604_v50 }
 0x150   :  { %v851_v55 = vadd.f32 %v850_v54, %v682_v43 }
 0x151   :  { %v774_v32 = vadd.f32 %v773_v15, %v605_v52 }
 0x152   :  { %v931_v49 = vmax.f32 %v851_v55, 0.0  ;;  %v630_v55 = vadd.f32 %v1712_v61, %v1735_v11 }
 0x153   :  { %v900_v56 = vmax.f32 %v774_v32, 0.0  ;;  %v783_v57 = vpop.f32.mrf.mxu1 }
 0x154   :  { %995 = vst [vmem:[%s2222_s3 + $0x1a8] sm:$0xff] %v931_v49 }
 0x155   :  { %964 = vst [vmem:[%s2222_s3 + $0xb0] sm:$0xff] %v900_v56  ;;  %v684_v58 = vpop.f32.mrf.mxu2 }
 0x156   :  { %v685_v59 = vadd.f32 %v1712_v61, %v684_v58  ;;  %v606_v35 = vpop.f32.mrf.mxu0 }
 0x157   :  { %v607_v51 = vadd.f32 %v1712_v61, %v606_v35 }
 0x158   :  { %v854_v60 = vadd.f32 %v853_v40, %v685_v59 }
 0x159   :  { %v776_v62 = vadd.f32 %v775_v26, %v607_v51  ;;  %v863_v26 = vpop.f32.mrf.mxu3 }
 0x15a   :  { %v932_v1 = vmax.f32 %v854_v60, 0.0 }
 0x15b   :  { %v901_v2 = vmax.f32 %v776_v62, 0.0  ;;  %v785_v3 = vpop.f32.mrf.mxu1 }
 0x15c   :  { %996 = vst [vmem:[%s2222_s3 + $0x1b0] sm:$0xff] %v932_v1 }
 0x15d   :  { %965 = vst [vmem:[%s2222_s3 + $0xb8] sm:$0xff] %v901_v2  ;;  %v686_v4 = vpop.f32.mrf.mxu2 }
 0x15e   :  { %v687_v5 = vadd.f32 %v1712_v61, %v686_v4  ;;  %v609_v8 = vpop.f32.mrf.mxu0 }
 0x15f   :  { %v610_v9 = vadd.f32 %v1712_v61, %v609_v8 }
 0x160   :  { %v856_v10 = vadd.f32 %v855_v53, %v687_v5 }
 0x161   :  { %v779_v13 = vadd.f32 %v778_v38, %v610_v9  ;;  %v865_v42 = vpop.f32.mrf.mxu3 }
 0x162   :  { %v933_v41 = vmax.f32 %v856_v10, 0.0 }
 0x163   :  { %v902_v7 = vmax.f32 %v779_v13, 0.0  ;;  %v788_v16 = vpop.f32.mrf.mxu1 }
 0x164   :  { %997 = vst [vmem:[%s2222_s3 + $0x1b8] sm:$0xff] %v933_v41 }
 0x165   :  { %966 = vst [vmem:[%s2222_s3 + $0xc0] sm:$0xff] %v902_v7  ;;  %v689_v46 = vpop.f32.mrf.mxu2 }
 0x166   :  { %v690_v15 = vadd.f32 %v1712_v61, %v689_v46  ;;  %v611_v18 = vpop.f32.mrf.mxu0 }
 0x167   :  { %v612_v19 = vadd.f32 %v1712_v61, %v611_v18 }
 0x168   :  { %v859_v20 = vadd.f32 %v858_v63, %v690_v15  ;;  %v632_v63 = vadd.f32 %v1712_v61, %v1765_v25 }
 0x169   :  { %v781_v6 = vadd.f32 %v780_v48, %v612_v19  ;;  %v868_v53 = vpop.f32.mrf.mxu3 }
 0x16a   :  { %v934_v21 = vmax.f32 %v859_v20, 0.0 }
 0x16b   :  { %v903_v23 = vmax.f32 %v781_v6, 0.0  ;;  %v790_v24 = vpop.f32.mrf.mxu1 }
 0x16c   :  { %998 = vst [vmem:[%s2222_s3 + $0x1c0] sm:$0xff] %v934_v21 }
 0x16d   :  { %967 = vst [vmem:[%s2222_s3 + $0xc8] sm:$0xff] %v903_v23  ;;  %v691_v0 = vpop.f32.mrf.mxu2 }
 0x16e   :  { %v692_v54 = vadd.f32 %v1712_v61, %v691_v0  ;;  %v614_v22 = vpop.f32.mrf.mxu0 }
 0x16f   :  { %v615_v27 = vadd.f32 %v1712_v61, %v614_v22 }
 0x170   :  { %v861_v28 = vadd.f32 %v860_v17, %v692_v54 }
 0x171   :  { %v784_v30 = vadd.f32 %v783_v57, %v615_v27 }
 0x172   :  { %v935_v31 = vmax.f32 %v861_v28, 0.0 }
 0x173   :  { %v904_v33 = vmax.f32 %v784_v30, 0.0  ;;  %v793_v34 = vpop.f32.mrf.mxu1 }
 0x174   :  { %999 = vst [vmem:[%s2222_s3 + $0x1c8] sm:$0xff] %v935_v31 }
 0x175   :  { %968 = vst [vmem:[%s2222_s3 + $0xd0] sm:$0xff] %v904_v33  ;;  %v694_v37 = vpop.f32.mrf.mxu2 }
 0x176   :  { %v695_v38 = vadd.f32 %v1712_v61, %v694_v37  ;;  %v616_v39 = vpop.f32.mrf.mxu0 }
 0x177   :  { %v617_v40 = vadd.f32 %v1712_v61, %v616_v39 }
 0x178   :  { %v864_v44 = vadd.f32 %v863_v26, %v695_v38 }
 0x179   :  { %v786_v14 = vadd.f32 %v785_v3, %v617_v40  ;;  %v870_v3 = vpop.f32.mrf.mxu3 }
 0x17a   :  { %v936_v29 = vmax.f32 %v864_v44, 0.0 }
 0x17b   :  { %v905_v36 = vmax.f32 %v786_v14, 0.0  ;;  %v795_v45 = vpop.f32.mrf.mxu1 }
 0x17c   :  { %1000 = vst [vmem:[%s2222_s3 + $0x1d0] sm:$0xff] %v936_v29 }
 0x17d   :  { %969 = vst [vmem:[%s2222_s3 + $0xd8] sm:$0xff] %v905_v36  ;;  %v696_v47 = vpop.f32.mrf.mxu2 }
 0x17e   :  { %v697_v48 = vadd.f32 %v1712_v61, %v696_v47  ;;  %v619_v12 = vpop.f32.mrf.mxu0 }
 0x17f   :  { %v620_v43 = vadd.f32 %v1712_v61, %v619_v12 }
 0x180   :  { %v866_v50 = vadd.f32 %v865_v42, %v697_v48 }
 0x181   :  { %v789_v52 = vadd.f32 %v788_v16, %v620_v43  ;;  %v873_v46 = vpop.f32.mrf.mxu3 }
 0x182   :  { %v937_v32 = vmax.f32 %v866_v50, 0.0 }
 0x183   :  { %v906_v49 = vmax.f32 %v789_v52, 0.0  ;;  %v798_v56 = vpop.f32.mrf.mxu1 }
 0x184   :  { %1001 = vst [vmem:[%s2222_s3 + $0x1d8] sm:$0xff] %v937_v32  ;;  %v799_v57 = vadd.f32 %v798_v56, %v630_v55 }
 0x185   :  { %970 = vst [vmem:[%s2222_s3 + $0xe0] sm:$0xff] %v906_v49  ;;  %v699_v58 = vpop.f32.mrf.mxu2 }
 0x186   :  { %v910_v59 = vmax.f32 %v799_v57, 0.0  ;;  %v700_v35 = vadd.f32 %v1712_v61, %v699_v58  ;;  %v621_v51 = vpop.f32.mrf.mxu0 }
 0x187   :  { %v622_v60 = vadd.f32 %v1712_v61, %v621_v51 }
 0x188   :  { %974 = vst [vmem:[%s2222_s3 + $0x100] sm:$0xff] %v910_v59  ;;  %v869_v11 = vadd.f32 %v868_v53, %v700_v35 }
 0x189   :  { %v791_v62 = vadd.f32 %v790_v24, %v622_v60  ;;  %v875_v54 = vpop.f32.mrf.mxu3 }
 0x18a   :  { %v938_v1 = vmax.f32 %v869_v11, 0.0 }
 0x18b   :  { %v907_v2 = vmax.f32 %v791_v62, 0.0  ;;  %v800_v4 = vpop.f32.mrf.mxu1 }
 0x18c   :  { %1002 = vst [vmem:[%s2222_s3 + $0x1e0] sm:$0xff] %v938_v1  ;;  %v801_v5 = vadd.f32 %v800_v4, %v632_v63 }
 0x18d   :  { %971 = vst [vmem:[%s2222_s3 + $0xe8] sm:$0xff] %v907_v2  ;;  %v701_v8 = vpop.f32.mrf.mxu2 }
 0x18e   :  { %v911_v9 = vmax.f32 %v801_v5, 0.0  ;;  %v702_v10 = vadd.f32 %v1712_v61, %v701_v8  ;;  %v624_v13 = vpop.f32.mrf.mxu0 }
 0x18f   :  { %v625_v25 = vadd.f32 %v1712_v61, %v624_v13 }
 0x190   :  { %975 = vst [vmem:[%s2222_s3 + $0x108] sm:$0xff] %v911_v9  ;;  %v871_v41 = vadd.f32 %v870_v3, %v702_v10 }
 0x191   :  { %v794_v7 = vadd.f32 %v793_v34, %v625_v25 }
 0x192   :  { %v939_v16 = vmax.f32 %v871_v41, 0.0 }
 0x193   :  { %v908_v17 = vmax.f32 %v794_v7, 0.0 }
 0x194   :  { %1003 = vst [vmem:[%s2222_s3 + $0x1e8] sm:$0xff] %v939_v16 }
 0x195   :  { %972 = vst [vmem:[%s2222_s3 + $0xf0] sm:$0xff] %v908_v17  ;;  %v704_v15 = vpop.f32.mrf.mxu2 }
 0x196   :  { %v705_v18 = vadd.f32 %v1712_v61, %v704_v15  ;;  %v626_v19 = vpop.f32.mrf.mxu0 }
 0x197   :  { %v627_v20 = vadd.f32 %v1712_v61, %v626_v19 }
 0x198   :  { %v874_v6 = vadd.f32 %v873_v46, %v705_v18 }
 0x199   :  { %v796_v21 = vadd.f32 %v795_v45, %v627_v20 }
 0x19a   :  { %v940_v23 = vmax.f32 %v874_v6, 0.0 }
 0x19b   :  { %v909_v24 = vmax.f32 %v796_v21, 0.0 }
 0x19c   :  { %1004 = vst [vmem:[%s2222_s3 + $0x1f0] sm:$0xff] %v940_v23 }
 0x19d   :  { %973 = vst [vmem:[%s2222_s3 + $0xf8] sm:$0xff] %v909_v24  ;;  %v706_v0 = vpop.f32.mrf.mxu2 }
 0x19e   :  { %v707_v26 = vadd.f32 %v1712_v61, %v706_v0 }
 0x1a0   :  { %v876_v22 = vadd.f32 %v875_v54, %v707_v26 }
 0x1a2   :  { %v941_v27 = vmax.f32 %v876_v22, 0.0 }
 0x1a4   :  { %1005 = vst [vmem:[%s2222_s3 + $0x1f8] sm:$0xff] %v941_v27 }

// kernel: forward.8
= control target key start
LH: loop header
LB: loop body
LE: loop exit
PB: predicated region body
PF: predicated region fallthrough
CT: control target
= control target key end

     0   :  { %vm315_vm0 = vcmask 261120   ;;  %s1053_s1 = inlined_call_operand.vmem [shape: bf16[288,128], index: 1, kind: input, shape index: {}]   ;;  %s1054_s0 = inlined_call_operand.vmem [shape: bf16[128,288], index: 0, kind: input, shape index: {}]   ;;  %s1055_s2 = inlined_call_operand.vmem [shape: f32[1,128], index: 2, kind: input, shape index: {}]   ;;  %s1056_s3 = inlined_call_operand.vmem [shape: f32[128,128], index: 3, kind: output, shape index: {}]  }
   0x1   :  { %v730_v0 = vld [vmem:[%s1053_s1 + $0x38] sm:$0xff]  ;;  %v740_v1 = vld [vmem:[%s1053_s1 + $0x88] sm:$0xff]  ;;  %v729_v3 = vld [vmem:[%s1053_s1 + $0x30] sm:$0xff] }
   0x2   :  { %v738_v2 = vld [vmem:[%s1053_s1 + $0x78] sm:$0xff]  ;;  %340 = vmatpush.bf16.msra.mxu0 %v730_v0  ;;  %741 = vmatpush.bf16.msra.mxu3 %v730_v0  ;;  %v739_v4 = vld [vmem:[%s1053_s1 + $0x80] sm:$0xff]  ;;  %v737_v5 = vld [vmem:[%s1053_s1 + $0x70] sm:$0xff] }
   0x3   :  { %444 = vmatpush.bf16.msra.mxu2 %v740_v1  ;;  %389 = vmatpush.bf16.msra.mxu1 %v738_v2  ;;  %v533_v6 = vld [vmem:[%s1054_s0 + $0x8] sm:$0xf]  ;;  %v701_v7 = vld [vmem:[%s1054_s0 + $0x10] sm:$0xf0]  ;;  %v727_v11 = vld [vmem:[%s1053_s1 + $0x20] sm:$0xff] }
   0x4   :  { %v534_v8 = vor.u32 %v701_v7, %v533_v6  ;;  %v728_v9 = vld [vmem:[%s1053_s1 + $0x28] sm:$0xff]  ;;  %v735_v12 = vld [vmem:[%s1053_s1 + $0x60] sm:$0xff]  ;;  %v726_v13 = vld [vmem:[%s1053_s1 + $0x18] sm:$0xff] }
   0x5   :  { %v736_v10 = vld [vmem:[%s1053_s1 + $0x68] sm:$0xff]  ;;  %v734_v14 = vld [vmem:[%s1053_s1 + $0x58] sm:$0xff]  ;;  %v725_v15 = vld [vmem:[%s1053_s1 + $0x10] sm:$0xff] }
   0x6   :  { %341 = vmatpush.bf16.msra.mxu0 %v729_v3  ;;  %742 = vmatpush.bf16.msra.mxu3 %v729_v3  ;;  %v733_v16 = vld [vmem:[%s1053_s1 + $0x50] sm:$0xff]  ;;  %v545_v17 = vld [vmem:[%s1054_s0 + $0x20] sm:$0xf]  ;;  %v704_v18 = vld [vmem:[%s1054_s0 + $0x28] sm:$0xf0] }
   0x7   :  { %445 = vmatpush.bf16.msra.mxu2 %v739_v4  ;;  %390 = vmatpush.bf16.msra.mxu1 %v737_v5  ;;  %v546_v19 = vor.u32 %v704_v18, %v545_v17  ;;  %v724_v20 = vld [vmem:[%s1053_s1 + $0x8] sm:$0xff]  ;;  %v723_v22 = vld [vmem:[%s1053_s1] sm:$0xff]  ;;  %v597_v26 = vld [vmem:[%s1054_s0 + $0x90] sm:$0xf] }
   0x8   :  { %v732_v21 = vld [vmem:[%s1053_s1 + $0x48] sm:$0xff]  ;;  %v731_v23 = vld [vmem:[%s1053_s1 + $0x40] sm:$0xff]  ;;  %v718_v27 = vld [vmem:[%s1054_s0 + $0x98] sm:$0xf0] }
   0x9   :  { %v525_v24 = vld [vmem:[%s1054_s0] sm:$0xf]  ;;  %v700_v25 = vld [vmem:[%s1054_s0 + $0x8] sm:$0xf0]  ;;  %v699_v28 = vld [vmem:[%s1054_s0 + $0x4] sm:$0xf]  ;;  %v598_v31 = vor.u32 %v718_v27, %v597_v26 }
   0xa   :  { %691 = vmatmul.msk.bf16.vlgmr.msra.gmra.mxu2 %vm315_vm0, %v534_v8  ;;  %342 = vmatpush.bf16.msra.mxu0 %v728_v9  ;;  %v527_v29 = vld [vmem:[%s1054_s0 + $0xc] sm:$0xf0]  ;;  %v526_v30 = vor.u32 %v700_v25, %v525_v24  ;;  %v557_v33 = vld [vmem:[%s1054_s0 + $0x38] sm:$0xf]  ;;  %v707_v34 = vld [vmem:[%s1054_s0 + $0x40] sm:$0xf0] }
   0xb   :  { %743 = vmatpush.bf16.msra.mxu3 %v728_v9  ;;  %391 = vmatpush.bf16.msra.mxu1 %v736_v10  ;;  %v530_v32 = vor.u32 %v699_v28, %v527_v29  ;;  %v558_v35 = vor.u32 %v707_v34, %v557_v33  ;;  %v537_v36 = vld [vmem:[%s1054_s0 + $0x18] sm:$0xf]  ;;  %v703_v37 = vld [vmem:[%s1054_s0 + $0x20] sm:$0xf0]  ;;  %v609_v38 = vld [vmem:[%s1054_s0 + $0xa8] sm:$0xf] }
   0xc   :  { %v721_v39 = vld [vmem:[%s1054_s0 + $0xb0] sm:$0xf0]  ;;  %v702_v40 = vld [vmem:[%s1054_s0 + $0x1c] sm:$0xf]  ;;  %v539_v41 = vld [vmem:[%s1054_s0 + $0x24] sm:$0xf0]  ;;  %v538_v42 = vor.u32 %v703_v37, %v537_v36 }
   0xd   :  { %v610_v43 = vor.u32 %v721_v39, %v609_v38  ;;  %v542_v44 = vor.u32 %v702_v40, %v539_v41  ;;  %v569_v45 = vld [vmem:[%s1054_s0 + $0x50] sm:$0xf]  ;;  %v710_v46 = vld [vmem:[%s1054_s0 + $0x58] sm:$0xf0]  ;;  %v717_v50 = vld [vmem:[%s1054_s0 + $0x94] sm:$0xf] }
   0xe   :  { %343 = vmatpush.bf16.msra.mxu0 %v727_v11  ;;  %v570_v47 = vor.u32 %v710_v46, %v569_v45  ;;  %v549_v48 = vld [vmem:[%s1054_s0 + $0x30] sm:$0xf]  ;;  %v706_v49 = vld [vmem:[%s1054_s0 + $0x38] sm:$0xf0]  ;;  %v599_v51 = vld [vmem:[%s1054_s0 + $0x9c] sm:$0xf0] }
   0xf   :  { %744 = vmatpush.bf16.msra.mxu3 %v727_v11  ;;  %392 = vmatpush.bf16.msra.mxu1 %v735_v12  ;;  %v705_v52 = vld [vmem:[%s1054_s0 + $0x34] sm:$0xf]  ;;  %v551_v53 = vld [vmem:[%s1054_s0 + $0x3c] sm:$0xf0]  ;;  %v550_v54 = vor.u32 %v706_v49, %v549_v48  ;;  %v602_v55 = vor.u32 %v717_v50, %v599_v51  ;;  %v581_v57 = vld [vmem:[%s1054_s0 + $0x68] sm:$0xf] }
  0x10   :  { %v554_v56 = vor.u32 %v705_v52, %v551_v53  ;;  %v713_v58 = vld [vmem:[%s1054_s0 + $0x70] sm:$0xf0]  ;;  %v561_v60 = vld [vmem:[%s1054_s0 + $0x48] sm:$0xf]  ;;  %v720_v62 = vld [vmem:[%s1054_s0 + $0xac] sm:$0xf] }
  0x11   :  { %v582_v59 = vor.u32 %v713_v58, %v581_v57  ;;  %v709_v61 = vld [vmem:[%s1054_s0 + $0x50] sm:$0xf0]  ;;  %v611_v63 = vld [vmem:[%s1054_s0 + $0xb4] sm:$0xf0]  ;;  %v708_v0 = vld [vmem:[%s1054_s0 + $0x4c] sm:$0xf] }
  0x12   :  { %344 = vmatpush.bf16.msra.mxu0 %v726_v13  ;;  %v563_v1 = vld [vmem:[%s1054_s0 + $0x54] sm:$0xf0]  ;;  %v614_v3 = vor.u32 %v720_v62, %v611_v63  ;;  %v716_v6 = vld [vmem:[%s1054_s0 + $0x88] sm:$0xf0]  ;;  %v573_v8 = vld [vmem:[%s1054_s0 + $0x60] sm:$0xf] }
  0x13   :  { %745 = vmatpush.bf16.msra.mxu3 %v726_v13  ;;  %393 = vmatpush.bf16.msra.mxu1 %v734_v14  ;;  %v566_v4 = vor.u32 %v708_v0, %v563_v1  ;;  %v712_v9 = vld [vmem:[%s1054_s0 + $0x68] sm:$0xf0]  ;;  %v575_v11 = vld [vmem:[%s1054_s0 + $0x6c] sm:$0xf0]  ;;  %v585_v17 = vld [vmem:[%s1054_s0 + $0x78] sm:$0xf] }
  0x14   :  { %v715_v18 = vld [vmem:[%s1054_s0 + $0x80] sm:$0xf0]  ;;  %v722_v24 = vld [vmem:[%s1054_s0 + $0xb8] sm:$0xf0]  ;;  %v987_v28 = vld [vmem:[%s1055_s2] ss:$0 sm:$0xff] }
  0x16   :  { %345 = vmatpush.bf16.msra.mxu0 %v725_v15 }
  0x17   :  { %746 = vmatpush.bf16.msra.mxu3 %v725_v15  ;;  %394 = vmatpush.bf16.msra.mxu1 %v733_v16  ;;  %v719_v15 = vld [vmem:[%s1054_s0 + $0xa0] sm:$0xf0] }
  0x1a   :  { %692 = vmatmul.msk.bf16.gmra.mxu2 %vm315_vm0, %v546_v19  ;;  %346 = vmatpush.bf16.msra.mxu0 %v724_v20  ;;  %v714_v19 = vld [vmem:[%s1054_s0 + $0x7c] sm:$0xf] }
  0x1b   :  { %747 = vmatpush.bf16.msra.mxu3 %v724_v20  ;;  %395 = vmatpush.bf16.msra.mxu1 %v732_v21  ;;  %v587_v20 = vld [vmem:[%s1054_s0 + $0x84] sm:$0xf0] }
  0x1e   :  { %347 = vmatpush.bf16.msra.mxu0 %v723_v22 }
  0x1f   :  { %748 = vmatpush.bf16.msra.mxu3 %v723_v22  ;;  %396 = vmatpush.bf16.msra.mxu1 %v731_v23  ;;  %v590_v22 = vor.u32 %v714_v19, %v587_v20 }
  0x21   :  { %348 = vmatmul.bf16.vlgmr.msra.gmra.mxu0 %v526_v30 }
  0x22   :  { %378 = vmatmul.bf16.vlgmr.msra.gmra.mxu3 %v598_v31  ;;  %397 = vmatmul.bf16.vlgmr.msra.gmra.mxu1 %v530_v32 }
  0x23   :  { %749 = vmatpush.bf16.msrb.mxu3 %v738_v2  ;;  %v562_v2 = vor.u32 %v709_v61, %v561_v60 }
  0x27   :  { %750 = vmatpush.bf16.msrb.mxu3 %v737_v5  ;;  %v593_v5 = vld [vmem:[%s1054_s0 + $0x80] sm:$0xf] }
  0x28   :  { %v594_v7 = vor.u32 %v716_v6, %v593_v5 }
  0x2a   :  { %693 = vmatmul.msk.bf16.gmra.mxu2 %vm315_vm0, %v558_v35 }
  0x2b   :  { %751 = vmatpush.bf16.msrb.mxu3 %v736_v10  ;;  %v711_v10 = vld [vmem:[%s1054_s0 + $0x64] sm:$0xf] }
  0x2c   :  { %v578_v13 = vor.u32 %v711_v10, %v575_v11 }
  0x2f   :  { %752 = vmatpush.bf16.msrb.mxu3 %v735_v12  ;;  %v574_v12 = vor.u32 %v712_v9, %v573_v8 }
  0x31   :  { %353 = vmatmul.bf16.gmra.mxu0 %v538_v42 }
  0x32   :  { %383 = vmatmul.bf16.gmra.mxu3 %v610_v43  ;;  %402 = vmatmul.bf16.gmra.mxu1 %v542_v44 }
  0x33   :  { %753 = vmatpush.bf16.msrb.mxu3 %v734_v14  ;;  %v605_v14 = vld [vmem:[%s1054_s0 + $0x98] sm:$0xf] }
  0x37   :  { %754 = vmatpush.bf16.msrb.mxu3 %v733_v16  ;;  %v606_v16 = vor.u32 %v719_v15, %v605_v14 }
  0x3a   :  { %694 = vmatmul.msk.bf16.gmra.mxu2 %vm315_vm0, %v570_v47 }
  0x3b   :  { %755 = vmatpush.bf16.msrb.mxu3 %v732_v21  ;;  %v586_v21 = vor.u32 %v715_v18, %v585_v17 }
  0x3f   :  { %756 = vmatpush.bf16.msrb.mxu3 %v731_v23  ;;  %v617_v23 = vld [vmem:[%s1054_s0 + $0xb0] sm:$0xf] }
  0x40   :  { %v618_v25 = vor.u32 %v722_v24, %v617_v23 }
  0x41   :  { %358 = vmatmul.bf16.gmra.mxu0 %v550_v54 }
  0x42   :  { %427 = vmatmul.bf16.vlgmr.msrb.gmra.mxu3 %v602_v55  ;;  %407 = vmatmul.bf16.gmra.mxu1 %v554_v56 }
  0x4a   :  { %695 = vmatmul.msk.bf16.gmra.mxu2 %vm315_vm0, %v582_v59 }
  0x51   :  { %363 = vmatmul.bf16.gmra.mxu0 %v562_v2 }
  0x52   :  { %432 = vmatmul.bf16.gmra.mxu3 %v614_v3  ;;  %412 = vmatmul.bf16.gmra.mxu1 %v566_v4 }
  0x5a   :  { %696 = vmatmul.msk.bf16.gmra.mxu2 %vm315_vm0, %v594_v7 }
  0x61   :  { %368 = vmatmul.bf16.gmra.mxu0 %v574_v12 }
  0x62   :  { %417 = vmatmul.bf16.gmra.mxu1 %v578_v13 }
  0x6a   :  { %697 = vmatmul.msk.bf16.gmra.mxu2 %vm315_vm0, %v606_v16 }
  0x71   :  { %373 = vmatmul.bf16.gmra.mxu0 %v586_v21 }
  0x72   :  { %422 = vmatmul.bf16.gmra.mxu1 %v590_v22 }
  0x7a   :  { %698 = vmatmul.msk.bf16.gmra.mxu2 %vm315_vm0, %v618_v25 }
  0x8d   :  { %v447_v26 = vpop.f32.mrf.mxu2 }
  0x95   :  { %v449_v27 = vpop.f32.mrf.mxu2 }
  0x9d   :  { %v452_v29 = vpop.f32.mrf.mxu2 }
  0x9e   :  { %v349_v30 = vpop.f32.mrf.mxu0 }
  0x9f   :  { %v350_v31 = vadd.f32 %v987_v28, %v349_v30  ;;  %v398_v32 = vpop.f32.mrf.mxu1 }
  0xa1   :  { %v399_v33 = vadd.f32 %v398_v32, %v350_v31 }
  0xa3   :  { %v448_v34 = vadd.f32 %v447_v26, %v399_v33 }
  0xa5   :  { %v487_v35 = vmax.f32 %v448_v34, 0.0  ;;  %v454_v36 = vpop.f32.mrf.mxu2  ;;  %v379_v55 = vpop.f32.mrf.mxu3 }
  0xa6   :  { %v351_v37 = vpop.f32.mrf.mxu0 }
  0xa7   :  { %503 = vst [vmem:[%s1056_s3] sm:$0xff] %v487_v35  ;;  %v352_v38 = vadd.f32 %v987_v28, %v351_v37  ;;  %v400_v39 = vpop.f32.mrf.mxu1 }
  0xa9   :  { %v401_v40 = vadd.f32 %v400_v39, %v352_v38  ;;  %v380_v38 = vadd.f32 %v987_v28, %v379_v55 }
  0xab   :  { %v450_v41 = vadd.f32 %v449_v27, %v401_v40 }
  0xad   :  { %v488_v42 = vmax.f32 %v450_v41, 0.0  ;;  %v457_v43 = vpop.f32.mrf.mxu2  ;;  %v381_v0 = vpop.f32.mrf.mxu3 }
  0xae   :  { %v354_v44 = vpop.f32.mrf.mxu0 }
  0xaf   :  { %504 = vst [vmem:[%s1056_s3 + $0x8] sm:$0xff] %v488_v42  ;;  %v355_v45 = vadd.f32 %v987_v28, %v354_v44  ;;  %v403_v46 = vpop.f32.mrf.mxu1 }
  0xb1   :  { %v404_v47 = vadd.f32 %v403_v46, %v355_v45 }
  0xb3   :  { %v453_v48 = vadd.f32 %v452_v29, %v404_v47 }
  0xb5   :  { %v489_v49 = vmax.f32 %v453_v48, 0.0  ;;  %v459_v50 = vpop.f32.mrf.mxu2  ;;  %v384_v11 = vpop.f32.mrf.mxu3 }
  0xb6   :  { %v356_v51 = vpop.f32.mrf.mxu0 }
  0xb7   :  { %505 = vst [vmem:[%s1056_s3 + $0x10] sm:$0xff] %v489_v49  ;;  %v357_v52 = vadd.f32 %v987_v28, %v356_v51  ;;  %v405_v53 = vpop.f32.mrf.mxu1  ;;  %v382_v49 = vadd.f32 %v987_v28, %v381_v0 }
  0xb9   :  { %v406_v54 = vadd.f32 %v405_v53, %v357_v52 }
  0xbb   :  { %v455_v56 = vadd.f32 %v454_v36, %v406_v54 }
  0xbd   :  { %v490_v57 = vmax.f32 %v455_v56, 0.0  ;;  %v462_v58 = vpop.f32.mrf.mxu2  ;;  %v386_v21 = vpop.f32.mrf.mxu3 }
  0xbe   :  { %v359_v59 = vpop.f32.mrf.mxu0 }
  0xbf   :  { %506 = vst [vmem:[%s1056_s3 + $0x18] sm:$0xff] %v490_v57  ;;  %v360_v60 = vadd.f32 %v987_v28, %v359_v59  ;;  %v408_v61 = vpop.f32.mrf.mxu1 }
  0xc1   :  { %v409_v62 = vadd.f32 %v408_v61, %v360_v60  ;;  %v385_v61 = vadd.f32 %v987_v28, %v384_v11 }
  0xc3   :  { %v458_v63 = vadd.f32 %v457_v43, %v409_v62 }
  0xc5   :  { %v491_v1 = vmax.f32 %v458_v63, 0.0  ;;  %v464_v2 = vpop.f32.mrf.mxu2  ;;  %v428_v31 = vpop.f32.mrf.mxu3 }
  0xc6   :  { %v361_v3 = vpop.f32.mrf.mxu0  ;;  %v429_v41 = vadd.f32 %v428_v31, %v380_v38 }
  0xc7   :  { %507 = vst [vmem:[%s1056_s3 + $0x20] sm:$0xff] %v491_v1  ;;  %v362_v4 = vadd.f32 %v987_v28, %v361_v3  ;;  %v410_v5 = vpop.f32.mrf.mxu1 }
  0xc9   :  { %v411_v6 = vadd.f32 %v410_v5, %v362_v4  ;;  %v387_v5 = vadd.f32 %v987_v28, %v386_v21 }
  0xcb   :  { %v460_v7 = vadd.f32 %v459_v50, %v411_v6 }
  0xcd   :  { %v492_v8 = vmax.f32 %v460_v7, 0.0  ;;  %v467_v9 = vpop.f32.mrf.mxu2  ;;  %v430_v42 = vpop.f32.mrf.mxu3 }
  0xce   :  { %v364_v10 = vpop.f32.mrf.mxu0  ;;  %v431_v53 = vadd.f32 %v430_v42, %v382_v49 }
  0xcf   :  { %508 = vst [vmem:[%s1056_s3 + $0x28] sm:$0xff] %v492_v8  ;;  %v365_v12 = vadd.f32 %v987_v28, %v364_v10  ;;  %v413_v13 = vpop.f32.mrf.mxu1 }
  0xd1   :  { %v414_v14 = vadd.f32 %v413_v13, %v365_v12 }
  0xd3   :  { %v463_v15 = vadd.f32 %v462_v58, %v414_v14 }
  0xd5   :  { %v493_v16 = vmax.f32 %v463_v15, 0.0  ;;  %v469_v17 = vpop.f32.mrf.mxu2  ;;  %v433_v58 = vpop.f32.mrf.mxu3 }
  0xd6   :  { %v366_v18 = vpop.f32.mrf.mxu0  ;;  %v434_v1 = vadd.f32 %v433_v58, %v385_v61 }
  0xd7   :  { %509 = vst [vmem:[%s1056_s3 + $0x30] sm:$0xff] %v493_v16  ;;  %v367_v19 = vadd.f32 %v987_v28, %v366_v18  ;;  %v415_v20 = vpop.f32.mrf.mxu1 }
  0xd9   :  { %v416_v22 = vadd.f32 %v415_v20, %v367_v19 }
  0xdb   :  { %v465_v23 = vadd.f32 %v464_v2, %v416_v22 }
  0xdd   :  { %v494_v24 = vmax.f32 %v465_v23, 0.0  ;;  %v472_v25 = vpop.f32.mrf.mxu2  ;;  %v435_v7 = vpop.f32.mrf.mxu3 }
  0xde   :  { %v369_v26 = vpop.f32.mrf.mxu0  ;;  %v436_v8 = vadd.f32 %v435_v7, %v387_v5 }
  0xdf   :  { %510 = vst [vmem:[%s1056_s3 + $0x38] sm:$0xff] %v494_v24  ;;  %v370_v27 = vadd.f32 %v987_v28, %v369_v26  ;;  %v418_v29 = vpop.f32.mrf.mxu1 }
  0xe1   :  { %v419_v30 = vadd.f32 %v418_v29, %v370_v27 }
  0xe3   :  { %v468_v32 = vadd.f32 %v467_v9, %v419_v30 }
  0xe5   :  { %v495_v33 = vmax.f32 %v468_v32, 0.0  ;;  %v474_v34 = vpop.f32.mrf.mxu2 }
  0xe6   :  { %v371_v35 = vpop.f32.mrf.mxu0 }
  0xe7   :  { %511 = vst [vmem:[%s1056_s3 + $0x40] sm:$0xff] %v495_v33  ;;  %v372_v36 = vadd.f32 %v987_v28, %v371_v35  ;;  %v420_v37 = vpop.f32.mrf.mxu1 }
  0xe9   :  { %v421_v39 = vadd.f32 %v420_v37, %v372_v36 }
  0xeb   :  { %v470_v40 = vadd.f32 %v469_v17, %v421_v39 }
  0xed   :  { %v496_v43 = vmax.f32 %v470_v40, 0.0  ;;  %v477_v44 = vpop.f32.mrf.mxu2 }
  0xee   :  { %v478_v45 = vadd.f32 %v477_v44, %v429_v41  ;;  %v374_v46 = vpop.f32.mrf.mxu0 }
  0xef   :  { %512 = vst [vmem:[%s1056_s3 + $0x48] sm:$0xff] %v496_v43  ;;  %v375_v47 = vadd.f32 %v987_v28, %v374_v46  ;;  %v423_v48 = vpop.f32.mrf.mxu1 }
  0xf0   :  { %v499_v50 = vmax.f32 %v478_v45, 0.0 }
  0xf1   :  { %v424_v51 = vadd.f32 %v423_v48, %v375_v47 }
  0xf2   :  { %515 = vst [vmem:[%s1056_s3 + $0x60] sm:$0xff] %v499_v50 }
  0xf3   :  { %v473_v52 = vadd.f32 %v472_v25, %v424_v51 }
  0xf5   :  { %v497_v54 = vmax.f32 %v473_v52, 0.0  ;;  %v479_v55 = vpop.f32.mrf.mxu2 }
  0xf6   :  { %v480_v56 = vadd.f32 %v479_v55, %v431_v53  ;;  %v376_v57 = vpop.f32.mrf.mxu0 }
  0xf7   :  { %513 = vst [vmem:[%s1056_s3 + $0x50] sm:$0xff] %v497_v54  ;;  %v377_v59 = vadd.f32 %v987_v28, %v376_v57  ;;  %v425_v60 = vpop.f32.mrf.mxu1 }
  0xf8   :  { %v500_v62 = vmax.f32 %v480_v56, 0.0 }
  0xf9   :  { %v426_v63 = vadd.f32 %v425_v60, %v377_v59 }
  0xfa   :  { %516 = vst [vmem:[%s1056_s3 + $0x68] sm:$0xff] %v500_v62 }
  0xfb   :  { %v475_v0 = vadd.f32 %v474_v34, %v426_v63 }
  0xfd   :  { %v498_v2 = vmax.f32 %v475_v0, 0.0  ;;  %v482_v3 = vpop.f32.mrf.mxu2 }
  0xfe   :  { %v483_v4 = vadd.f32 %v482_v3, %v434_v1 }
  0xff   :  { %514 = vst [vmem:[%s1056_s3 + $0x58] sm:$0xff] %v498_v2 }
 0x100   :  { %v501_v6 = vmax.f32 %v483_v4, 0.0 }
 0x102   :  { %517 = vst [vmem:[%s1056_s3 + $0x70] sm:$0xff] %v501_v6 }
 0x105   :  { %v484_v9 = vpop.f32.mrf.mxu2 }
 0x106   :  { %v485_v10 = vadd.f32 %v484_v9, %v436_v8 }
 0x108   :  { %v502_v11 = vmax.f32 %v485_v10, 0.0 }
 0x10a   :  { %518 = vst [vmem:[%s1056_s3 + $0x78] sm:$0xff] %v502_v11 }

// kernel: forward.9
= control target key start
LH: loop header
LB: loop body
LE: loop exit
PB: predicated region body
PF: predicated region fallthrough
CT: control target
= control target key end

     0   :  { %vm369_vm0 = vcmask 523264   ;;  %s923_s1 = inlined_call_operand.vmem [shape: bf16[576,128], index: 1, kind: input, shape index: {}]   ;;  %s924_s2 = inlined_call_operand.vmem [shape: f32[1,128], index: 2, kind: input, shape index: {}]   ;;  %s925_s0 = inlined_call_operand.vmem [shape: bf16[32,576], index: 0, kind: input, shape index: {}]   ;;  %s926_s3 = inlined_call_operand.vmem [shape: f32[32,128], index: 3, kind: output, shape index: {}]  }
   0x1   :  { %v686_v0 = vld [vmem:[%s923_s1 + $0x38] sm:$0xff]  ;;  %v685_v4 = vld [vmem:[%s923_s1 + $0x30] sm:$0xff]  ;;  %v684_v8 = vld [vmem:[%s923_s1 + $0x28] sm:$0xff] }
   0x2   :  { %v694_v1 = vld [vmem:[%s923_s1 + $0x78] sm:$0xff]  ;;  %376 = vmatpush.bf16.msra.mxu0 %v686_v0  ;;  %v693_v5 = vld [vmem:[%s923_s1 + $0x70] sm:$0xff]  ;;  %v692_v9 = vld [vmem:[%s923_s1 + $0x68] sm:$0xff] }
   0x3   :  { %v702_v2 = vld [vmem:[%s923_s1 + $0xb8] sm:$0xff]  ;;  %395 = vmatpush.bf16.msra.mxu1 %v694_v1  ;;  %v701_v6 = vld [vmem:[%s923_s1 + $0xb0] sm:$0xff]  ;;  %v700_v10 = vld [vmem:[%s923_s1 + $0xa8] sm:$0xff] }
   0x4   :  { %v710_v3 = vld [vmem:[%s923_s1 + $0xf8] sm:$0xff]  ;;  %414 = vmatpush.bf16.msra.mxu2 %v702_v2  ;;  %v709_v7 = vld [vmem:[%s923_s1 + $0xf0] sm:$0xff]  ;;  %v708_v11 = vld [vmem:[%s923_s1 + $0xe8] sm:$0xff] }
   0x5   :  { %433 = vmatpush.bf16.msra.mxu3 %v710_v3  ;;  %v683_v12 = vld [vmem:[%s923_s1 + $0x20] sm:$0xff]  ;;  %v682_v16 = vld [vmem:[%s923_s1 + $0x18] sm:$0xff]  ;;  %v681_v20 = vld [vmem:[%s923_s1 + $0x10] sm:$0xff] }
   0x6   :  { %377 = vmatpush.bf16.msra.mxu0 %v685_v4  ;;  %v691_v13 = vld [vmem:[%s923_s1 + $0x60] sm:$0xff]  ;;  %v690_v17 = vld [vmem:[%s923_s1 + $0x58] sm:$0xff]  ;;  %v689_v21 = vld [vmem:[%s923_s1 + $0x50] sm:$0xff] }
   0x7   :  { %396 = vmatpush.bf16.msra.mxu1 %v693_v5  ;;  %v699_v14 = vld [vmem:[%s923_s1 + $0xa0] sm:$0xff]  ;;  %v698_v18 = vld [vmem:[%s923_s1 + $0x98] sm:$0xff]  ;;  %v697_v22 = vld [vmem:[%s923_s1 + $0x90] sm:$0xff] }
   0x8   :  { %415 = vmatpush.bf16.msra.mxu2 %v701_v6  ;;  %v707_v15 = vld [vmem:[%s923_s1 + $0xe0] sm:$0xff]  ;;  %v706_v19 = vld [vmem:[%s923_s1 + $0xd8] sm:$0xff]  ;;  %v705_v23 = vld [vmem:[%s923_s1 + $0xd0] sm:$0xff] }
   0x9   :  { %434 = vmatpush.bf16.msra.mxu3 %v709_v7  ;;  %v680_v24 = vld [vmem:[%s923_s1 + $0x8] sm:$0xff]  ;;  %v679_v28 = vld [vmem:[%s923_s1] sm:$0xff]  ;;  %v671_v33 = vld [vmem:[%s925_s0 + $0x10] sm:$0xf0] }
   0xa   :  { %378 = vmatpush.bf16.msra.mxu0 %v684_v8  ;;  %v688_v25 = vld [vmem:[%s923_s1 + $0x48] sm:$0xff]  ;;  %v687_v29 = vld [vmem:[%s923_s1 + $0x40] sm:$0xff]  ;;  %v487_v35 = vld [vmem:[%s925_s0 + $0x14] sm:$0xf0] }
   0xb   :  { %397 = vmatpush.bf16.msra.mxu1 %v692_v9  ;;  %v696_v26 = vld [vmem:[%s923_s1 + $0x88] sm:$0xff]  ;;  %v695_v30 = vld [vmem:[%s923_s1 + $0x80] sm:$0xff]  ;;  %v672_v37 = vld [vmem:[%s925_s0 + $0x18] sm:$0xf0] }
   0xc   :  { %416 = vmatpush.bf16.msra.mxu2 %v700_v10  ;;  %v704_v27 = vld [vmem:[%s923_s1 + $0xc8] sm:$0xff]  ;;  %v703_v31 = vld [vmem:[%s923_s1 + $0xc0] sm:$0xff]  ;;  %v714_v40 = vld [vmem:[%s923_s1 + $0x118] sm:$0xff] }
   0xd   :  { %435 = vmatpush.bf16.msra.mxu3 %v708_v11  ;;  %v485_v32 = vld [vmem:[%s925_s0] sm:$0xf]  ;;  %v669_v34 = vld [vmem:[%s925_s0 + $0x4] sm:$0xf]  ;;  %v493_v36 = vld [vmem:[%s925_s0 + $0x8] sm:$0xf] }
   0xe   :  { %379 = vmatpush.bf16.msra.mxu0 %v683_v12  ;;  %v670_v38 = vld [vmem:[%s925_s0 + $0xc] sm:$0xf]  ;;  %v495_v39 = vld [vmem:[%s925_s0 + $0x1c] sm:$0xf0]  ;;  %v486_v41 = vor.u32 %v671_v33, %v485_v32  ;;  %v490_v42 = vor.u32 %v669_v34, %v487_v35  ;;  %v494_v43 = vor.u32 %v672_v37, %v493_v36  ;;  %v713_v45 = vld [vmem:[%s923_s1 + $0x110] sm:$0xff] }
   0xf   :  { %398 = vmatpush.bf16.msra.mxu1 %v691_v13  ;;  %v498_v44 = vor.u32 %v670_v38, %v495_v39  ;;  %v712_v46 = vld [vmem:[%s923_s1 + $0x108] sm:$0xff]  ;;  %v711_v47 = vld [vmem:[%s923_s1 + $0x100] sm:$0xff]  ;;  %v676_v49 = vld [vmem:[%s925_s0 + $0x38] sm:$0xf0] }
  0x10   :  { %417 = vmatpush.bf16.msra.mxu2 %v699_v14  ;;  %v505_v48 = vld [vmem:[%s925_s0 + $0x28] sm:$0xf]  ;;  %v674_v50 = vld [vmem:[%s925_s0 + $0x2c] sm:$0xf]  ;;  %v507_v51 = vld [vmem:[%s925_s0 + $0x3c] sm:$0xf0] }
  0x11   :  { %436 = vmatpush.bf16.msra.mxu3 %v707_v15  ;;  %v513_v52 = vld [vmem:[%s925_s0 + $0x30] sm:$0xf]  ;;  %v677_v53 = vld [vmem:[%s925_s0 + $0x40] sm:$0xf0]  ;;  %v675_v54 = vld [vmem:[%s925_s0 + $0x34] sm:$0xf]  ;;  %v506_v56 = vor.u32 %v676_v49, %v505_v48  ;;  %v510_v57 = vor.u32 %v674_v50, %v507_v51 }
  0x12   :  { %380 = vmatpush.bf16.msra.mxu0 %v682_v16  ;;  %v515_v55 = vld [vmem:[%s925_s0 + $0x44] sm:$0xf0]  ;;  %v514_v58 = vor.u32 %v677_v53, %v513_v52  ;;  %v501_v60 = vld [vmem:[%s925_s0 + $0x10] sm:$0xf]  ;;  %v673_v61 = vld [vmem:[%s925_s0 + $0x20] sm:$0xf0] }
  0x13   :  { %399 = vmatpush.bf16.msra.mxu1 %v690_v17  ;;  %v518_v59 = vor.u32 %v675_v54, %v515_v55  ;;  %v521_v62 = vld [vmem:[%s925_s0 + $0x38] sm:$0xf]  ;;  %v678_v63 = vld [vmem:[%s925_s0 + $0x48] sm:$0xf0]  ;;  %v502_v0 = vor.u32 %v673_v61, %v501_v60  ;;  %v719_v11 = vld [vmem:[%s924_s2] ss:$0 sm:$0xff] }
  0x14   :  { %418 = vmatpush.bf16.msra.mxu2 %v698_v18  ;;  %v522_v1 = vor.u32 %v678_v63, %v521_v62 }
  0x15   :  { %437 = vmatpush.bf16.msra.mxu3 %v706_v19 }
  0x16   :  { %381 = vmatpush.bf16.msra.mxu0 %v681_v20 }
  0x17   :  { %400 = vmatpush.bf16.msra.mxu1 %v689_v21 }
  0x18   :  { %419 = vmatpush.bf16.msra.mxu2 %v697_v22 }
  0x19   :  { %438 = vmatpush.bf16.msra.mxu3 %v705_v23 }
  0x1a   :  { %382 = vmatpush.bf16.msra.mxu0 %v680_v24 }
  0x1b   :  { %401 = vmatpush.bf16.msra.mxu1 %v688_v25 }
  0x1c   :  { %420 = vmatpush.bf16.msra.mxu2 %v696_v26 }
  0x1d   :  { %439 = vmatpush.bf16.msra.mxu3 %v704_v27 }
  0x1e   :  { %383 = vmatpush.bf16.msra.mxu0 %v679_v28 }
  0x1f   :  { %402 = vmatpush.bf16.msra.mxu1 %v687_v29 }
  0x20   :  { %421 = vmatpush.bf16.msra.mxu2 %v695_v30 }
  0x21   :  { %440 = vmatpush.bf16.msra.mxu3 %v703_v31  ;;  %384 = vmatmul.bf16.vlgmr.msra.gmra.mxu0 %v486_v41 }
  0x22   :  { %456 = vmatpush.bf16.msrb.mxu0 %v714_v40  ;;  %403 = vmatmul.bf16.vlgmr.msra.gmra.mxu1 %v490_v42 }
  0x23   :  { %715 = vmatpush.bf16.msrb.mxu1 %v714_v40  ;;  %422 = vmatmul.bf16.vlgmr.msra.gmra.mxu2 %v494_v43 }
  0x24   :  { %441 = vmatmul.bf16.vlgmr.msra.gmra.mxu3 %v498_v44 }
  0x26   :  { %457 = vmatpush.bf16.msrb.mxu0 %v713_v45 }
  0x27   :  { %716 = vmatpush.bf16.msrb.mxu1 %v713_v45 }
  0x2a   :  { %458 = vmatpush.bf16.msrb.mxu0 %v712_v46 }
  0x2b   :  { %717 = vmatpush.bf16.msrb.mxu1 %v712_v46 }
  0x2e   :  { %459 = vmatpush.bf16.msrb.mxu0 %v711_v47 }
  0x2f   :  { %718 = vmatpush.bf16.msrb.mxu1 %v711_v47 }
  0x31   :  { %389 = vmatmul.bf16.gmra.mxu0 %v506_v56 }
  0x32   :  { %408 = vmatmul.bf16.gmra.mxu1 %v510_v57 }
  0x33   :  { %427 = vmatmul.bf16.gmra.mxu2 %v514_v58 }
  0x34   :  { %446 = vmatmul.bf16.gmra.mxu3 %v518_v59 }
  0x41   :  { %667 = vmatmul.msk.bf16.vlgmr.msrb.gmra.mxu0 %vm369_vm0, %v502_v0 }
  0x42   :  { %668 = vmatmul.msk.bf16.vlgmr.msrb.gmra.mxu1 %vm369_vm0, %v522_v1 }
  0x9e   :  { %v385_v2 = vpop.f32.mrf.mxu0 }
  0x9f   :  { %v404_v3 = vpop.f32.mrf.mxu1  ;;  %v386_v13 = vadd.f32 %v719_v11, %v385_v2 }
  0xa1   :  { %v405_v18 = vadd.f32 %v404_v3, %v386_v13 }
  0xa6   :  { %v423_v4 = vpop.f32.mrf.mxu2  ;;  %v387_v6 = vpop.f32.mrf.mxu0 }
  0xa7   :  { %v442_v5 = vpop.f32.mrf.mxu3  ;;  %v406_v7 = vpop.f32.mrf.mxu1  ;;  %v424_v20 = vadd.f32 %v423_v4, %v405_v18  ;;  %v388_v23 = vadd.f32 %v719_v11, %v387_v6 }
  0xa9   :  { %v443_v25 = vadd.f32 %v442_v5, %v424_v20  ;;  %v407_v30 = vadd.f32 %v406_v7, %v388_v23 }
  0xae   :  { %v425_v8 = vpop.f32.mrf.mxu2  ;;  %v390_v9 = vpop.f32.mrf.mxu0 }
  0xaf   :  { %v409_v10 = vpop.f32.mrf.mxu1  ;;  %v444_v12 = vpop.f32.mrf.mxu3  ;;  %v391_v14 = vadd.f32 %v719_v11, %v390_v9  ;;  %v426_v34 = vadd.f32 %v425_v8, %v407_v30 }
  0xb1   :  { %v410_v19 = vadd.f32 %v409_v10, %v391_v14  ;;  %v445_v39 = vadd.f32 %v444_v12, %v426_v34 }
  0xb6   :  { %v428_v15 = vpop.f32.mrf.mxu2  ;;  %v392_v16 = vpop.f32.mrf.mxu0 }
  0xb7   :  { %v411_v17 = vpop.f32.mrf.mxu1  ;;  %v429_v21 = vadd.f32 %v428_v15, %v410_v19  ;;  %v447_v22 = vpop.f32.mrf.mxu3  ;;  %v393_v24 = vadd.f32 %v719_v11, %v392_v16 }
  0xb9   :  { %v448_v26 = vadd.f32 %v447_v22, %v429_v21  ;;  %v412_v31 = vadd.f32 %v411_v17, %v393_v24 }
  0xbe   :  { %v430_v27 = vpop.f32.mrf.mxu2  ;;  %v461_v28 = vpop.f32.mrf.mxu0 }
  0xbf   :  { %v466_v29 = vpop.f32.mrf.mxu1  ;;  %v462_v32 = vadd.f32 %v461_v28, %v443_v25  ;;  %v431_v35 = vadd.f32 %v430_v27, %v412_v31  ;;  %v449_v38 = vpop.f32.mrf.mxu3 }
  0xc0   :  { %v467_v33 = vadd.f32 %v466_v29, %v448_v26 }
  0xc1   :  { %v471_v36 = vmax.f32 %v462_v32, 0.0  ;;  %v450_v40 = vadd.f32 %v449_v38, %v431_v35 }
  0xc2   :  { %v473_v37 = vmax.f32 %v467_v33, 0.0 }
  0xc3   :  { %475 = vst [vmem:[%s926_s3] sm:$0xff] %v471_v36 }
  0xc4   :  { %477 = vst [vmem:[%s926_s3 + $0x10] sm:$0xff] %v473_v37 }
  0xc6   :  { %v463_v41 = vpop.f32.mrf.mxu0 }
  0xc7   :  { %v468_v42 = vpop.f32.mrf.mxu1  ;;  %v464_v43 = vadd.f32 %v463_v41, %v445_v39 }
  0xc8   :  { %v469_v44 = vadd.f32 %v468_v42, %v450_v40 }
  0xc9   :  { %v472_v45 = vmax.f32 %v464_v43, 0.0 }
  0xca   :  { %v474_v46 = vmax.f32 %v469_v44, 0.0 }
  0xcb   :  { %476 = vst [vmem:[%s926_s3 + $0x8] sm:$0xff] %v472_v45 }
  0xcc   :  { %478 = vst [vmem:[%s926_s3 + $0x18] sm:$0xff] %v474_v46 }

// kernel: forward.10
= control target key start
LH: loop header
LB: loop body
LE: loop exit
PB: predicated region body
PF: predicated region fallthrough
CT: control target
= control target key end

     0   :  { %s214_s1 = inlined_call_operand.vmem [shape: bf16[128,128], index: 1, kind: input, shape index: {}]   ;;  %s215_s2 = inlined_call_operand.vmem [shape: f32[1,128], index: 2, kind: input, shape index: {}]   ;;  %s216_s0 = inlined_call_operand.vmem [shape: bf16[16,128], index: 0, kind: input, shape index: {}]   ;;  %s217_s3 = inlined_call_operand.vmem [shape: f32[16,128], index: 3, kind: output, shape index: {}]  }
   0x1   :  { %v156_v0 = vld [vmem:[%s214_s1 + $0x38] sm:$0xff]  ;;  %v155_v1 = vld [vmem:[%s214_s1 + $0x30] sm:$0xff]  ;;  %v154_v2 = vld [vmem:[%s214_s1 + $0x28] sm:$0xff] }
   0x2   :  { %90 = vmatpush.bf16.msra.mxu0 %v156_v0  ;;  %v153_v3 = vld [vmem:[%s214_s1 + $0x20] sm:$0xff]  ;;  %v152_v4 = vld [vmem:[%s214_s1 + $0x18] sm:$0xff]  ;;  %v151_v5 = vld [vmem:[%s214_s1 + $0x10] sm:$0xff] }
   0x3   :  { %v150_v6 = vld [vmem:[%s214_s1 + $0x8] sm:$0xff]  ;;  %v149_v7 = vld [vmem:[%s214_s1] sm:$0xff] }
   0x4   :  { %v148_v8 = vld [vmem:[%s216_s0] sm:$0xff] }
   0x5   :  { %v157_v9 = vld [vmem:[%s215_s2] ss:$0 sm:$0xff] }
   0x6   :  { %91 = vmatpush.bf16.msra.mxu0 %v155_v1 }
   0xa   :  { %92 = vmatpush.bf16.msra.mxu0 %v154_v2 }
   0xe   :  { %93 = vmatpush.bf16.msra.mxu0 %v153_v3 }
  0x12   :  { %94 = vmatpush.bf16.msra.mxu0 %v152_v4 }
  0x16   :  { %95 = vmatpush.bf16.msra.mxu0 %v151_v5 }
  0x1a   :  { %96 = vmatpush.bf16.msra.mxu0 %v150_v6 }
  0x1e   :  { %97 = vmatpush.bf16.msra.mxu0 %v149_v7 }
  0x21   :  { %98 = vmatmul.bf16.vlgmr.msra.gmra.mxu0 %v148_v8 }
  0x9e   :  { %v99_v10 = vpop.f32.mrf.mxu0 }
  0x9f   :  { %v100_v11 = vadd.f32 %v157_v9, %v99_v10 }
  0xa1   :  { %v104_v12 = vmax.f32 %v100_v11, 0.0 }
  0xa3   :  { %106 = vst [vmem:[%s217_s3] sm:$0xff] %v104_v12 }
  0xa6   :  { %v101_v13 = vpop.f32.mrf.mxu0 }
  0xa7   :  { %v102_v14 = vadd.f32 %v157_v9, %v101_v13 }
  0xa9   :  { %v105_v15 = vmax.f32 %v102_v14, 0.0 }
  0xab   :  { %107 = vst [vmem:[%s217_s3 + $0x8] sm:$0xff] %v105_v15 }

// kernel: forward.11
= control target key start
LH: loop header
LB: loop body
LE: loop exit
PB: predicated region body
PF: predicated region fallthrough
CT: control target
= control target key end

     0   :  { %vm42_vm0 = vcmask 261120   ;;  %s121_s1 = inlined_call_operand.vmem [shape: bf16[32,128], index: 1, kind: input, shape index: {}]   ;;  %s122_s2 = inlined_call_operand.vmem [shape: f32[1,128], index: 2, kind: input, shape index: {}]   ;;  %s123_s0 = inlined_call_operand.vmem [shape: bf16[16,32], index: 0, kind: input, shape index: {}]   ;;  %s124_s3 = inlined_call_operand.vmem [shape: f32[16,128], index: 3, kind: output, shape index: {}]  }
   0x1   :  { %v81_v0 = vld [vmem:[%s121_s1 + $0x8] sm:$0xff]  ;;  %v80_v1 = vld [vmem:[%s121_s1] sm:$0xff] }
   0x2   :  { %52 = vmatpush.bf16.msra.mxu0 %v81_v0  ;;  %v79_v2 = vld [vmem:[%s123_s0] sm:$0xff] }
   0x3   :  { %v82_v3 = vld [vmem:[%s122_s2] ss:$0 sm:$0xff] }
   0x6   :  { %53 = vmatpush.bf16.msra.mxu0 %v80_v1 }
   0x9   :  { %78 = vmatmul.msk.bf16.vlgmr.msra.gmra.mxu0 %vm42_vm0, %v79_v2 }
  0x86   :  { %v55_v4 = vpop.f32.mrf.mxu0 }
  0x87   :  { %v56_v5 = vadd.f32 %v82_v3, %v55_v4 }
  0x89   :  { %60 = vst [vmem:[%s124_s3] sm:$0xff] %v56_v5 }
  0x8e   :  { %v57_v6 = vpop.f32.mrf.mxu0 }
  0x8f   :  { %v58_v7 = vadd.f32 %v82_v3, %v57_v6 }
  0x91   :  { %61 = vst [vmem:[%s124_s3 + $0x8] sm:$0xff] %v58_v7 }

</bundles_post_ra>
